<compile_context>
chip_gen: v5e
topology: v5e:2x2
jax: 0.10.0
libtpu: 0.0.40
codegen_flags: <defaults>
</compile_context>

<pallas_src>
import functools

import jax
import jax.numpy as jnp
from jax.experimental import pallas as pl
from jax.experimental.pallas import tpu as pltpu


def _sep_conv_kernel(x_ref, wdw_ref, wpw_ref, beff_ref, o_ref, *,
                     K, dilation, W_pad, H_tile, H_TILES, L_pad, CP, CPo):
    """One (packed-batch group, row tile) per grid step.

    x_ref   : (1, CP, FLAT)   packed flattened padded planes (CP = NPACK*C)
    wdw_ref : (CP, K*K)       depthwise weights (tiled over NPACK)
    wpw_ref : (CPo, CP)       block-diagonal pointwise weights (CPo = NPACK*C_out)
    beff_ref: (CPo, 1)        effective bias (= b_pw + wpw @ b_dw, tiled)
    o_ref   : (1, CPo, L_pad) lane-dense output tile (extra cols sliced away
                              in the wrapper)
    """
    r = pl.program_id(1)
    wdw = wdw_ref[...].astype(jnp.float32)    # (CP, K*K)
    wpw = wpw_ref[...].astype(jnp.float32)    # (CPo, CP)
    beff = beff_ref[...].astype(jnp.float32)  # (CPo, 1)

    # Statically unrolled row tiles: only one branch runs per grid step, and
    # every tap slice keeps a static lane offset.
    for tile in range(H_TILES):

        @pl.when(r == tile)
        def _(tile=tile):
            base = tile * H_tile * W_pad

            # --- depthwise: K*K lane-dense tap slices, full-vreg VPU MACs ---
            acc = jnp.zeros((CP, L_pad), dtype=jnp.float32)
            for kh in range(K):
                for kw in range(K):
                    t = kh * K + kw
                    off = base + kh * dilation * W_pad + kw * dilation
                    win = x_ref[0, :, off:off + L_pad].astype(jnp.float32)
                    acc_new = acc + win * wdw[:, t:t + 1]
                    acc = acc_new

            # --- pointwise 1x1 as CP broadcast MACs (pure VPU) + fused bias.
            # TODO(synk): move to MXU (jnp.dot) once C grows past ~32.
            out = jnp.zeros((CPo, L_pad), dtype=jnp.float32)
            for c in range(CP):
                out = out + wpw[:, c:c + 1] * acc[c:c + 1, :]
            out = out + beff

            o_ref[0] = out.astype(o_ref.dtype)


def separable_conv2d(x_nchw, w_dw, b_dw, w_pw, b_pw, *,
                     kernel_size, stride=1, padding=0, dilation=1):
    """x_nchw: (N, C, H, W); w_dw: (C, 1, K, K); b_dw: (C,);
       w_pw: (C_out, C, 1, 1); b_pw: (C_out,). Returns (N, C_out, H_out, W_out)."""
    assert stride == 1, "only stride=1 implemented"  # TODO(synk): stride > 1
    N, C, H, W = x_nchw.shape
    K = kernel_size
    C_out = w_pw.shape[0]

    H_pad = H + 2 * padding
    W_pad = W + 2 * padding
    H_out = H_pad - dilation * (K - 1)
    W_out = W_pad - dilation * (K - 1)
    assert H_out > 0 and W_out > 0

    # --- batch packing onto sublanes: NPACK*C multiple of 8 when possible ---
    SUBLANES = 8  # f32 vreg sublane height
    npack = 1
    for p in range(1, N + 1):
        if N % p == 0 and (p * C) % SUBLANES == 0:
            npack = p
            break
    G = N // npack
    CP, CPo = npack * C, npack * C_out

    # --- row tiles: keep >= 2 "parallel" grid steps for v7x megacore even
    #     when the whole batch packs into a single group ---
    H_TILES = 2 if (G < 2 and H_out % 2 == 0) else 1
    H_tile = H_out // H_TILES

    L_tile = H_tile * W_pad                     # true per-tile output length
    L_pad = ((L_tile + 127) // 128) * 128       # lane-dense (128-mult) store len
    halo = (K - 1) * dilation * (W_pad + 1)
    flat_needed = (H_TILES - 1) * H_tile * W_pad + halo + L_pad

    # Single-pad wrapper: spatial zero padding plus enough extra bottom rows
    # that the flattened plane covers every (garbage-column) tap slice.
    extra_rows = max(0, -(-(flat_needed - H_pad * W_pad) // W_pad))
    FLAT = (H_pad + extra_rows) * W_pad
    # VMEM refs have no runtime bounds check -> assert the no-OOB invariant.
    assert (H_TILES - 1) * H_tile * W_pad + halo + L_pad <= FLAT

    x_pad = jnp.pad(x_nchw, ((0, 0), (0, 0),
                             (padding, padding + extra_rows),
                             (padding, padding)))
    x_packed = x_pad.reshape(G, CP, FLAT)       # free (contiguous) reshape

    # --- expanded (tiny) weights so the kernel works on packed (CP, *) tiles ---
    wdw = jnp.tile(w_dw[:, 0, :, :].reshape(C, K * K), (npack, 1))       # (CP, K*K)
    wpw_s = w_pw[:, :, 0, 0].astype(jnp.float32)                         # (C_out, C)
    wpw = jnp.kron(jnp.eye(npack, dtype=jnp.float32), wpw_s)             # (CPo, CP)
    # Fold the depthwise bias into the pointwise bias (exact: pointwise is linear).
    b_eff = b_pw.astype(jnp.float32) + wpw_s @ b_dw.astype(jnp.float32)  # (C_out,)
    b_eff = jnp.tile(b_eff, (npack,)).reshape(CPo, 1)                    # (CPo, 1)

    kernel = functools.partial(
        _sep_conv_kernel, K=K, dilation=dilation, W_pad=W_pad,
        H_tile=H_tile, H_TILES=H_TILES, L_pad=L_pad, CP=CP, CPo=CPo)

    itemsize = jnp.dtype(x_nchw.dtype).itemsize
    cols = G * H_TILES * L_pad                  # columns the kernel computes
    cost = pl.CostEstimate(
        flops=2 * cols * (CP * K * K + CPo * CP),
        transcendentals=0,
        bytes_accessed=int(x_packed.size * itemsize * H_TILES
                           + (wdw.size + wpw.size + b_eff.size) * 4
                           + G * CPo * H_TILES * L_pad * itemsize),
    )

    out_flat = pl.pallas_call(
        kernel,
        out_shape=jax.ShapeDtypeStruct((G, CPo, H_TILES * L_pad), x_nchw.dtype),
        grid_spec=pltpu.PrefetchScalarGridSpec(
            num_scalar_prefetch=0,
            grid=(G, H_TILES),
            in_specs=[
                pl.BlockSpec((1, CP, FLAT), lambda g, r: (g, 0, 0)),
                pl.BlockSpec((CP, K * K), lambda g, r: (0, 0)),
                pl.BlockSpec((CPo, CP), lambda g, r: (0, 0)),
                pl.BlockSpec((CPo, 1), lambda g, r: (0, 0)),
            ],
            out_specs=pl.BlockSpec((1, CPo, L_pad), lambda g, r: (g, 0, r)),
        ),
        compiler_params=pltpu.CompilerParams(
            dimension_semantics=("parallel", "parallel")),
        cost_estimate=cost,
    )(x_packed, wdw, wpw, b_eff)

    # Free reshapes + cheap slices drop the lane-padding columns, the
    # horizontal-halo columns, and unpack the batch.
    out = out_flat.reshape(G, npack, C_out, H_TILES, L_pad)[..., :L_tile]
    out = out.reshape(N, C_out, H_out, W_pad)[:, :, :, :W_out]
    return out


def _reference(x_nchw, w_dw, b_dw, w_pw, b_pw, *, stride, padding, dilation):
    """Pure-JAX reference matching PyTorch Conv2d semantics (NCHW)."""
    C = x_nchw.shape[1]
    dn = jax.lax.conv_dimension_numbers(x_nchw.shape, w_dw.shape,
                                        ("NCHW", "OIHW", "NCHW"))
    dw = jax.lax.conv_general_dilated(
        x_nchw, w_dw, window_strides=(stride, stride),
        padding=[(padding, padding), (padding, padding)],
        rhs_dilation=(dilation, dilation), dimension_numbers=dn,
        feature_group_count=C)
    dw = dw + b_dw.reshape(1, -1, 1, 1)
    dn2 = jax.lax.conv_dimension_numbers(dw.shape, w_pw.shape,
                                         ("NCHW", "OIHW", "NCHW"))
    pw = jax.lax.conv_general_dilated(
        dw, w_pw, window_strides=(1, 1), padding=[(0, 0), (0, 0)],
        dimension_numbers=dn2)
    return pw + b_pw.reshape(1, -1, 1, 1)


if __name__ == "__main__":
    # SeparableConv2D(in_channels=4, out_channels=8, kernel_size=3,
    #                 stride=1, padding=1, dilation=1, bias=True)
    N, C_in, C_out, H, W = 2, 4, 8, 16, 16
    K, stride, padding, dilation = 3, 1, 1, 1

    key = jax.random.PRNGKey(0)
    kx, k1, k2, k3, k4 = jax.random.split(key, 5)

    x = jax.random.normal(kx, (N, C_in, H, W), dtype=jnp.float32)

    # Deterministic synthetic parameters (PyTorch Conv2d weight shapes).
    w_dw = 0.1 * jax.random.normal(k1, (C_in, 1, K, K), dtype=jnp.float32)
    b_dw = 0.1 * jax.random.normal(k2, (C_in,), dtype=jnp.float32)
    w_pw = 0.1 * jax.random.normal(k3, (C_out, C_in, 1, 1), dtype=jnp.float32)
    b_pw = 0.1 * jax.random.normal(k4, (C_out,), dtype=jnp.float32)

    out = separable_conv2d(x, w_dw, b_dw, w_pw, b_pw,
                           kernel_size=K, stride=stride,
                           padding=padding, dilation=dilation)
    out = jax.block_until_ready(out)

    ref = _reference(x, w_dw, b_dw, w_pw, b_pw,
                     stride=stride, padding=padding, dilation=dilation)
    assert out.shape == (N, C_out, H, W), out.shape
    assert jnp.allclose(out, ref, atol=1e-4, rtol=1e-4), \
        float(jnp.max(jnp.abs(out - ref)))

    print("KERNEL_OK")
</pallas_src>

<mosaic_0001>
module attributes {stable_mosaic.version = 11 : i64} {
  func.func @_sep_conv_kernel(%arg0: i32, %arg1: i32, %arg2: memref<1x8x450xf32, #tpu.memory_space<vmem>>, %arg3: memref<8x9xf32, #tpu.memory_space<vmem>>, %arg4: memref<16x8xf32, #tpu.memory_space<vmem>>, %arg5: memref<16x1xf32, #tpu.memory_space<vmem>>, %arg6: memref<1x16x256xf32, #tpu.memory_space<vmem>>) attributes {dimension_semantics = [#tpu.dimension_semantics<parallel>, #tpu.dimension_semantics<parallel>], iteration_bounds = array<i64: 1, 2>, scalar_prefetch = 0 : i64, scratch_operands = 0 : i64, tpu.core_type = #tpu.core_type<tc>, window_params = [{transform_indices = @transform_0, window_bounds = array<i64: 1, 8, 450>}, {pipeline_mode = #tpu.pipeline_mode<synchronous>, transform_indices = @transform_1, window_bounds = array<i64: 8, 9>}, {pipeline_mode = #tpu.pipeline_mode<synchronous>, transform_indices = @transform_2, window_bounds = array<i64: 16, 8>}, {pipeline_mode = #tpu.pipeline_mode<synchronous>, transform_indices = @transform_3, window_bounds = array<i64: 16, 1>}, {transform_indices = @transform_4, window_bounds = array<i64: 1, 16, 256>}]} {
    %c0 = arith.constant 0 : index
    %c0_0 = arith.constant 0 : index
    %0 = vector.load %arg3[%c0, %c0_0] : memref<8x9xf32, #tpu.memory_space<vmem>>, vector<8x9xf32>
    %c0_1 = arith.constant 0 : index
    %c0_2 = arith.constant 0 : index
    %1 = vector.load %arg4[%c0_1, %c0_2] : memref<16x8xf32, #tpu.memory_space<vmem>>, vector<16x8xf32>
    %c0_3 = arith.constant 0 : index
    %c0_4 = arith.constant 0 : index
    %2 = vector.load %arg5[%c0_3, %c0_4] : memref<16x1xf32, #tpu.memory_space<vmem>>, vector<16x1xf32>
    %c0_i32 = arith.constant 0 : i32
    %3 = arith.cmpi eq, %arg1, %c0_i32 : i32
    %4 = arith.extui %3 : i1 to i32
    %c0_i32_5 = arith.constant 0 : i32
    %5 = arith.cmpi ne, %4, %c0_i32_5 : i32
    scf.if %5 {
      %cst = arith.constant 0.000000e+00 : f32
      %9 = vector.broadcast %cst : f32 to vector<8x256xf32>
      %c0_7 = arith.constant 0 : index
      %c0_8 = arith.constant 0 : index
      %c0_9 = arith.constant 0 : index
      %10 = vector.load %arg2[%c0_7, %c0_8, %c0_9] : memref<1x8x450xf32, #tpu.memory_space<vmem>>, vector<1x8x256xf32>
      %11 = vector.shape_cast %10 : vector<1x8x256xf32> to vector<8x256xf32>
      %12 = vector.extract_strided_slice %0 {offsets = [0, 0], sizes = [8, 1], strides = [1, 1]} : vector<8x9xf32> to vector<8x1xf32>
      %13 = vector.broadcast %12 : vector<8x1xf32> to vector<8x256xf32>
      %14 = arith.mulf %11, %13 : vector<8x256xf32>
      %15 = arith.addf %9, %14 : vector<8x256xf32>
      %c0_10 = arith.constant 0 : index
      %c0_11 = arith.constant 0 : index
      %c1 = arith.constant 1 : index
      %16 = vector.load %arg2[%c0_10, %c0_11, %c1] : memref<1x8x450xf32, #tpu.memory_space<vmem>>, vector<1x8x256xf32>
      %17 = vector.shape_cast %16 : vector<1x8x256xf32> to vector<8x256xf32>
      %18 = vector.extract_strided_slice %0 {offsets = [0, 1], sizes = [8, 1], strides = [1, 1]} : vector<8x9xf32> to vector<8x1xf32>
      %19 = vector.broadcast %18 : vector<8x1xf32> to vector<8x256xf32>
      %20 = arith.mulf %17, %19 : vector<8x256xf32>
      %21 = arith.addf %15, %20 : vector<8x256xf32>
      %c0_12 = arith.constant 0 : index
      %c0_13 = arith.constant 0 : index
      %c2 = arith.constant 2 : index
      %22 = vector.load %arg2[%c0_12, %c0_13, %c2] : memref<1x8x450xf32, #tpu.memory_space<vmem>>, vector<1x8x256xf32>
      %23 = vector.shape_cast %22 : vector<1x8x256xf32> to vector<8x256xf32>
      %24 = vector.extract_strided_slice %0 {offsets = [0, 2], sizes = [8, 1], strides = [1, 1]} : vector<8x9xf32> to vector<8x1xf32>
      %25 = vector.broadcast %24 : vector<8x1xf32> to vector<8x256xf32>
      %26 = arith.mulf %23, %25 : vector<8x256xf32>
      %27 = arith.addf %21, %26 : vector<8x256xf32>
      %c0_14 = arith.constant 0 : index
      %c0_15 = arith.constant 0 : index
      %c18 = arith.constant 18 : index
      %28 = vector.load %arg2[%c0_14, %c0_15, %c18] : memref<1x8x450xf32, #tpu.memory_space<vmem>>, vector<1x8x256xf32>
      %29 = vector.shape_cast %28 : vector<1x8x256xf32> to vector<8x256xf32>
      %30 = vector.extract_strided_slice %0 {offsets = [0, 3], sizes = [8, 1], strides = [1, 1]} : vector<8x9xf32> to vector<8x1xf32>
      %31 = vector.broadcast %30 : vector<8x1xf32> to vector<8x256xf32>
      %32 = arith.mulf %29, %31 : vector<8x256xf32>
      %33 = arith.addf %27, %32 : vector<8x256xf32>
      %c0_16 = arith.constant 0 : index
      %c0_17 = arith.constant 0 : index
      %c19 = arith.constant 19 : index
      %34 = vector.load %arg2[%c0_16, %c0_17, %c19] : memref<1x8x450xf32, #tpu.memory_space<vmem>>, vector<1x8x256xf32>
      %35 = vector.shape_cast %34 : vector<1x8x256xf32> to vector<8x256xf32>
      %36 = vector.extract_strided_slice %0 {offsets = [0, 4], sizes = [8, 1], strides = [1, 1]} : vector<8x9xf32> to vector<8x1xf32>
      %37 = vector.broadcast %36 : vector<8x1xf32> to vector<8x256xf32>
      %38 = arith.mulf %35, %37 : vector<8x256xf32>
      %39 = arith.addf %33, %38 : vector<8x256xf32>
      %c0_18 = arith.constant 0 : index
      %c0_19 = arith.constant 0 : index
      %c20 = arith.constant 20 : index
      %40 = vector.load %arg2[%c0_18, %c0_19, %c20] : memref<1x8x450xf32, #tpu.memory_space<vmem>>, vector<1x8x256xf32>
      %41 = vector.shape_cast %40 : vector<1x8x256xf32> to vector<8x256xf32>
      %42 = vector.extract_strided_slice %0 {offsets = [0, 5], sizes = [8, 1], strides = [1, 1]} : vector<8x9xf32> to vector<8x1xf32>
      %43 = vector.broadcast %42 : vector<8x1xf32> to vector<8x256xf32>
      %44 = arith.mulf %41, %43 : vector<8x256xf32>
      %45 = arith.addf %39, %44 : vector<8x256xf32>
      %c0_20 = arith.constant 0 : index
      %c0_21 = arith.constant 0 : index
      %c36 = arith.constant 36 : index
      %46 = vector.load %arg2[%c0_20, %c0_21, %c36] : memref<1x8x450xf32, #tpu.memory_space<vmem>>, vector<1x8x256xf32>
      %47 = vector.shape_cast %46 : vector<1x8x256xf32> to vector<8x256xf32>
      %48 = vector.extract_strided_slice %0 {offsets = [0, 6], sizes = [8, 1], strides = [1, 1]} : vector<8x9xf32> to vector<8x1xf32>
      %49 = vector.broadcast %48 : vector<8x1xf32> to vector<8x256xf32>
      %50 = arith.mulf %47, %49 : vector<8x256xf32>
      %51 = arith.addf %45, %50 : vector<8x256xf32>
      %c0_22 = arith.constant 0 : index
      %c0_23 = arith.constant 0 : index
      %c37 = arith.constant 37 : index
      %52 = vector.load %arg2[%c0_22, %c0_23, %c37] : memref<1x8x450xf32, #tpu.memory_space<vmem>>, vector<1x8x256xf32>
      %53 = vector.shape_cast %52 : vector<1x8x256xf32> to vector<8x256xf32>
      %54 = vector.extract_strided_slice %0 {offsets = [0, 7], sizes = [8, 1], strides = [1, 1]} : vector<8x9xf32> to vector<8x1xf32>
      %55 = vector.broadcast %54 : vector<8x1xf32> to vector<8x256xf32>
      %56 = arith.mulf %53, %55 : vector<8x256xf32>
      %57 = arith.addf %51, %56 : vector<8x256xf32>
      %c0_24 = arith.constant 0 : index
      %c0_25 = arith.constant 0 : index
      %c38 = arith.constant 38 : index
      %58 = vector.load %arg2[%c0_24, %c0_25, %c38] : memref<1x8x450xf32, #tpu.memory_space<vmem>>, vector<1x8x256xf32>
      %59 = vector.shape_cast %58 : vector<1x8x256xf32> to vector<8x256xf32>
      %60 = vector.extract_strided_slice %0 {offsets = [0, 8], sizes = [8, 1], strides = [1, 1]} : vector<8x9xf32> to vector<8x1xf32>
      %61 = vector.broadcast %60 : vector<8x1xf32> to vector<8x256xf32>
      %62 = arith.mulf %59, %61 : vector<8x256xf32>
      %63 = arith.addf %57, %62 : vector<8x256xf32>
      %cst_26 = arith.constant 0.000000e+00 : f32
      %64 = vector.broadcast %cst_26 : f32 to vector<16x256xf32>
      %65 = vector.extract_strided_slice %1 {offsets = [0, 0], sizes = [16, 1], strides = [1, 1]} : vector<16x8xf32> to vector<16x1xf32>
      %66 = vector.extract_strided_slice %63 {offsets = [0, 0], sizes = [1, 256], strides = [1, 1]} : vector<8x256xf32> to vector<1x256xf32>
      %67 = vector.broadcast %65 : vector<16x1xf32> to vector<16x256xf32>
      %68 = vector.broadcast %66 : vector<1x256xf32> to vector<16x256xf32>
      %69 = arith.mulf %67, %68 : vector<16x256xf32>
      %70 = arith.addf %64, %69 : vector<16x256xf32>
      %71 = vector.extract_strided_slice %1 {offsets = [0, 1], sizes = [16, 1], strides = [1, 1]} : vector<16x8xf32> to vector<16x1xf32>
      %72 = vector.extract_strided_slice %63 {offsets = [1, 0], sizes = [1, 256], strides = [1, 1]} : vector<8x256xf32> to vector<1x256xf32>
      %73 = vector.broadcast %71 : vector<16x1xf32> to vector<16x256xf32>
      %74 = vector.broadcast %72 : vector<1x256xf32> to vector<16x256xf32>
      %75 = arith.mulf %73, %74 : vector<16x256xf32>
      %76 = arith.addf %70, %75 : vector<16x256xf32>
      %77 = vector.extract_strided_slice %1 {offsets = [0, 2], sizes = [16, 1], strides = [1, 1]} : vector<16x8xf32> to vector<16x1xf32>
      %78 = vector.extract_strided_slice %63 {offsets = [2, 0], sizes = [1, 256], strides = [1, 1]} : vector<8x256xf32> to vector<1x256xf32>
      %79 = vector.broadcast %77 : vector<16x1xf32> to vector<16x256xf32>
      %80 = vector.broadcast %78 : vector<1x256xf32> to vector<16x256xf32>
      %81 = arith.mulf %79, %80 : vector<16x256xf32>
      %82 = arith.addf %76, %81 : vector<16x256xf32>
      %83 = vector.extract_strided_slice %1 {offsets = [0, 3], sizes = [16, 1], strides = [1, 1]} : vector<16x8xf32> to vector<16x1xf32>
      %84 = vector.extract_strided_slice %63 {offsets = [3, 0], sizes = [1, 256], strides = [1, 1]} : vector<8x256xf32> to vector<1x256xf32>
      %85 = vector.broadcast %83 : vector<16x1xf32> to vector<16x256xf32>
      %86 = vector.broadcast %84 : vector<1x256xf32> to vector<16x256xf32>
      %87 = arith.mulf %85, %86 : vector<16x256xf32>
      %88 = arith.addf %82, %87 : vector<16x256xf32>
      %89 = vector.extract_strided_slice %1 {offsets = [0, 4], sizes = [16, 1], strides = [1, 1]} : vector<16x8xf32> to vector<16x1xf32>
      %90 = vector.extract_strided_slice %63 {offsets = [4, 0], sizes = [1, 256], strides = [1, 1]} : vector<8x256xf32> to vector<1x256xf32>
      %91 = vector.broadcast %89 : vector<16x1xf32> to vector<16x256xf32>
      %92 = vector.broadcast %90 : vector<1x256xf32> to vector<16x256xf32>
      %93 = arith.mulf %91, %92 : vector<16x256xf32>
      %94 = arith.addf %88, %93 : vector<16x256xf32>
      %95 = vector.extract_strided_slice %1 {offsets = [0, 5], sizes = [16, 1], strides = [1, 1]} : vector<16x8xf32> to vector<16x1xf32>
      %96 = vector.extract_strided_slice %63 {offsets = [5, 0], sizes = [1, 256], strides = [1, 1]} : vector<8x256xf32> to vector<1x256xf32>
      %97 = vector.broadcast %95 : vector<16x1xf32> to vector<16x256xf32>
      %98 = vector.broadcast %96 : vector<1x256xf32> to vector<16x256xf32>
      %99 = arith.mulf %97, %98 : vector<16x256xf32>
      %100 = arith.addf %94, %99 : vector<16x256xf32>
      %101 = vector.extract_strided_slice %1 {offsets = [0, 6], sizes = [16, 1], strides = [1, 1]} : vector<16x8xf32> to vector<16x1xf32>
      %102 = vector.extract_strided_slice %63 {offsets = [6, 0], sizes = [1, 256], strides = [1, 1]} : vector<8x256xf32> to vector<1x256xf32>
      %103 = vector.broadcast %101 : vector<16x1xf32> to vector<16x256xf32>
      %104 = vector.broadcast %102 : vector<1x256xf32> to vector<16x256xf32>
      %105 = arith.mulf %103, %104 : vector<16x256xf32>
      %106 = arith.addf %100, %105 : vector<16x256xf32>
      %107 = vector.extract_strided_slice %1 {offsets = [0, 7], sizes = [16, 1], strides = [1, 1]} : vector<16x8xf32> to vector<16x1xf32>
      %108 = vector.extract_strided_slice %63 {offsets = [7, 0], sizes = [1, 256], strides = [1, 1]} : vector<8x256xf32> to vector<1x256xf32>
      %109 = vector.broadcast %107 : vector<16x1xf32> to vector<16x256xf32>
      %110 = vector.broadcast %108 : vector<1x256xf32> to vector<16x256xf32>
      %111 = arith.mulf %109, %110 : vector<16x256xf32>
      %112 = arith.addf %106, %111 : vector<16x256xf32>
      %113 = vector.broadcast %2 : vector<16x1xf32> to vector<16x256xf32>
      %114 = arith.addf %112, %113 : vector<16x256xf32>
      %c0_27 = arith.constant 0 : index
      %c0_28 = arith.constant 0 : index
      %c0_29 = arith.constant 0 : index
      %115 = vector.load %arg6[%c0_27, %c0_28, %c0_29] : memref<1x16x256xf32, #tpu.memory_space<vmem>>, vector<1x16x256xf32>
      %116 = vector.shape_cast %115 : vector<1x16x256xf32> to vector<16x256xf32>
      %117 = vector.shape_cast %114 : vector<16x256xf32> to vector<1x16x256xf32>
      tpu.vector_store %arg6[%c0_27, %c0_28, %c0_29], %117 {strides = array<i32>} : memref<1x16x256xf32, #tpu.memory_space<vmem>>, vector<1x16x256xf32>,
    } else {
    }
    %c1_i32 = arith.constant 1 : i32
    %6 = arith.cmpi eq, %arg1, %c1_i32 : i32
    %7 = arith.extui %6 : i1 to i32
    %c0_i32_6 = arith.constant 0 : i32
    %8 = arith.cmpi ne, %7, %c0_i32_6 : i32
    scf.if %8 {
      %cst = arith.constant 0.000000e+00 : f32
      %9 = vector.broadcast %cst : f32 to vector<8x256xf32>
      %c0_7 = arith.constant 0 : index
      %c0_8 = arith.constant 0 : index
      %c144 = arith.constant 144 : index
      %10 = vector.load %arg2[%c0_7, %c0_8, %c144] : memref<1x8x450xf32, #tpu.memory_space<vmem>>, vector<1x8x256xf32>
      %11 = vector.shape_cast %10 : vector<1x8x256xf32> to vector<8x256xf32>
      %12 = vector.extract_strided_slice %0 {offsets = [0, 0], sizes = [8, 1], strides = [1, 1]} : vector<8x9xf32> to vector<8x1xf32>
      %13 = vector.broadcast %12 : vector<8x1xf32> to vector<8x256xf32>
      %14 = arith.mulf %11, %13 : vector<8x256xf32>
      %15 = arith.addf %9, %14 : vector<8x256xf32>
      %c0_9 = arith.constant 0 : index
      %c0_10 = arith.constant 0 : index
      %c145 = arith.constant 145 : index
      %16 = vector.load %arg2[%c0_9, %c0_10, %c145] : memref<1x8x450xf32, #tpu.memory_space<vmem>>, vector<1x8x256xf32>
      %17 = vector.shape_cast %16 : vector<1x8x256xf32> to vector<8x256xf32>
      %18 = vector.extract_strided_slice %0 {offsets = [0, 1], sizes = [8, 1], strides = [1, 1]} : vector<8x9xf32> to vector<8x1xf32>
      %19 = vector.broadcast %18 : vector<8x1xf32> to vector<8x256xf32>
      %20 = arith.mulf %17, %19 : vector<8x256xf32>
      %21 = arith.addf %15, %20 : vector<8x256xf32>
      %c0_11 = arith.constant 0 : index
      %c0_12 = arith.constant 0 : index
      %c146 = arith.constant 146 : index
      %22 = vector.load %arg2[%c0_11, %c0_12, %c146] : memref<1x8x450xf32, #tpu.memory_space<vmem>>, vector<1x8x256xf32>
      %23 = vector.shape_cast %22 : vector<1x8x256xf32> to vector<8x256xf32>
      %24 = vector.extract_strided_slice %0 {offsets = [0, 2], sizes = [8, 1], strides = [1, 1]} : vector<8x9xf32> to vector<8x1xf32>
      %25 = vector.broadcast %24 : vector<8x1xf32> to vector<8x256xf32>
      %26 = arith.mulf %23, %25 : vector<8x256xf32>
      %27 = arith.addf %21, %26 : vector<8x256xf32>
      %c0_13 = arith.constant 0 : index
      %c0_14 = arith.constant 0 : index
      %c162 = arith.constant 162 : index
      %28 = vector.load %arg2[%c0_13, %c0_14, %c162] : memref<1x8x450xf32, #tpu.memory_space<vmem>>, vector<1x8x256xf32>
      %29 = vector.shape_cast %28 : vector<1x8x256xf32> to vector<8x256xf32>
      %30 = vector.extract_strided_slice %0 {offsets = [0, 3], sizes = [8, 1], strides = [1, 1]} : vector<8x9xf32> to vector<8x1xf32>
      %31 = vector.broadcast %30 : vector<8x1xf32> to vector<8x256xf32>
      %32 = arith.mulf %29, %31 : vector<8x256xf32>
      %33 = arith.addf %27, %32 : vector<8x256xf32>
      %c0_15 = arith.constant 0 : index
      %c0_16 = arith.constant 0 : index
      %c163 = arith.constant 163 : index
      %34 = vector.load %arg2[%c0_15, %c0_16, %c163] : memref<1x8x450xf32, #tpu.memory_space<vmem>>, vector<1x8x256xf32>
      %35 = vector.shape_cast %34 : vector<1x8x256xf32> to vector<8x256xf32>
      %36 = vector.extract_strided_slice %0 {offsets = [0, 4], sizes = [8, 1], strides = [1, 1]} : vector<8x9xf32> to vector<8x1xf32>
      %37 = vector.broadcast %36 : vector<8x1xf32> to vector<8x256xf32>
      %38 = arith.mulf %35, %37 : vector<8x256xf32>
      %39 = arith.addf %33, %38 : vector<8x256xf32>
      %c0_17 = arith.constant 0 : index
      %c0_18 = arith.constant 0 : index
      %c164 = arith.constant 164 : index
      %40 = vector.load %arg2[%c0_17, %c0_18, %c164] : memref<1x8x450xf32, #tpu.memory_space<vmem>>, vector<1x8x256xf32>
      %41 = vector.shape_cast %40 : vector<1x8x256xf32> to vector<8x256xf32>
      %42 = vector.extract_strided_slice %0 {offsets = [0, 5], sizes = [8, 1], strides = [1, 1]} : vector<8x9xf32> to vector<8x1xf32>
      %43 = vector.broadcast %42 : vector<8x1xf32> to vector<8x256xf32>
      %44 = arith.mulf %41, %43 : vector<8x256xf32>
      %45 = arith.addf %39, %44 : vector<8x256xf32>
      %c0_19 = arith.constant 0 : index
      %c0_20 = arith.constant 0 : index
      %c180 = arith.constant 180 : index
      %46 = vector.load %arg2[%c0_19, %c0_20, %c180] : memref<1x8x450xf32, #tpu.memory_space<vmem>>, vector<1x8x256xf32>
      %47 = vector.shape_cast %46 : vector<1x8x256xf32> to vector<8x256xf32>
      %48 = vector.extract_strided_slice %0 {offsets = [0, 6], sizes = [8, 1], strides = [1, 1]} : vector<8x9xf32> to vector<8x1xf32>
      %49 = vector.broadcast %48 : vector<8x1xf32> to vector<8x256xf32>
      %50 = arith.mulf %47, %49 : vector<8x256xf32>
      %51 = arith.addf %45, %50 : vector<8x256xf32>
      %c0_21 = arith.constant 0 : index
      %c0_22 = arith.constant 0 : index
      %c181 = arith.constant 181 : index
      %52 = vector.load %arg2[%c0_21, %c0_22, %c181] : memref<1x8x450xf32, #tpu.memory_space<vmem>>, vector<1x8x256xf32>
      %53 = vector.shape_cast %52 : vector<1x8x256xf32> to vector<8x256xf32>
      %54 = vector.extract_strided_slice %0 {offsets = [0, 7], sizes = [8, 1], strides = [1, 1]} : vector<8x9xf32> to vector<8x1xf32>
      %55 = vector.broadcast %54 : vector<8x1xf32> to vector<8x256xf32>
      %56 = arith.mulf %53, %55 : vector<8x256xf32>
      %57 = arith.addf %51, %56 : vector<8x256xf32>
      %c0_23 = arith.constant 0 : index
      %c0_24 = arith.constant 0 : index
      %c182 = arith.constant 182 : index
      %58 = vector.load %arg2[%c0_23, %c0_24, %c182] : memref<1x8x450xf32, #tpu.memory_space<vmem>>, vector<1x8x256xf32>
      %59 = vector.shape_cast %58 : vector<1x8x256xf32> to vector<8x256xf32>
      %60 = vector.extract_strided_slice %0 {offsets = [0, 8], sizes = [8, 1], strides = [1, 1]} : vector<8x9xf32> to vector<8x1xf32>
      %61 = vector.broadcast %60 : vector<8x1xf32> to vector<8x256xf32>
      %62 = arith.mulf %59, %61 : vector<8x256xf32>
      %63 = arith.addf %57, %62 : vector<8x256xf32>
      %cst_25 = arith.constant 0.000000e+00 : f32
      %64 = vector.broadcast %cst_25 : f32 to vector<16x256xf32>
      %65 = vector.extract_strided_slice %1 {offsets = [0, 0], sizes = [16, 1], strides = [1, 1]} : vector<16x8xf32> to vector<16x1xf32>
      %66 = vector.extract_strided_slice %63 {offsets = [0, 0], sizes = [1, 256], strides = [1, 1]} : vector<8x256xf32> to vector<1x256xf32>
      %67 = vector.broadcast %65 : vector<16x1xf32> to vector<16x256xf32>
      %68 = vector.broadcast %66 : vector<1x256xf32> to vector<16x256xf32>
      %69 = arith.mulf %67, %68 : vector<16x256xf32>
      %70 = arith.addf %64, %69 : vector<16x256xf32>
      %71 = vector.extract_strided_slice %1 {offsets = [0, 1], sizes = [16, 1], strides = [1, 1]} : vector<16x8xf32> to vector<16x1xf32>
      %72 = vector.extract_strided_slice %63 {offsets = [1, 0], sizes = [1, 256], strides = [1, 1]} : vector<8x256xf32> to vector<1x256xf32>
      %73 = vector.broadcast %71 : vector<16x1xf32> to vector<16x256xf32>
      %74 = vector.broadcast %72 : vector<1x256xf32> to vector<16x256xf32>
      %75 = arith.mulf %73, %74 : vector<16x256xf32>
      %76 = arith.addf %70, %75 : vector<16x256xf32>
      %77 = vector.extract_strided_slice %1 {offsets = [0, 2], sizes = [16, 1], strides = [1, 1]} : vector<16x8xf32> to vector<16x1xf32>
      %78 = vector.extract_strided_slice %63 {offsets = [2, 0], sizes = [1, 256], strides = [1, 1]} : vector<8x256xf32> to vector<1x256xf32>
      %79 = vector.broadcast %77 : vector<16x1xf32> to vector<16x256xf32>
      %80 = vector.broadcast %78 : vector<1x256xf32> to vector<16x256xf32>
      %81 = arith.mulf %79, %80 : vector<16x256xf32>
      %82 = arith.addf %76, %81 : vector<16x256xf32>
      %83 = vector.extract_strided_slice %1 {offsets = [0, 3], sizes = [16, 1], strides = [1, 1]} : vector<16x8xf32> to vector<16x1xf32>
      %84 = vector.extract_strided_slice %63 {offsets = [3, 0], sizes = [1, 256], strides = [1, 1]} : vector<8x256xf32> to vector<1x256xf32>
      %85 = vector.broadcast %83 : vector<16x1xf32> to vector<16x256xf32>
      %86 = vector.broadcast %84 : vector<1x256xf32> to vector<16x256xf32>
      %87 = arith.mulf %85, %86 : vector<16x256xf32>
      %88 = arith.addf %82, %87 : vector<16x256xf32>
      %89 = vector.extract_strided_slice %1 {offsets = [0, 4], sizes = [16, 1], strides = [1, 1]} : vector<16x8xf32> to vector<16x1xf32>
      %90 = vector.extract_strided_slice %63 {offsets = [4, 0], sizes = [1, 256], strides = [1, 1]} : vector<8x256xf32> to vector<1x256xf32>
      %91 = vector.broadcast %89 : vector<16x1xf32> to vector<16x256xf32>
      %92 = vector.broadcast %90 : vector<1x256xf32> to vector<16x256xf32>
      %93 = arith.mulf %91, %92 : vector<16x256xf32>
      %94 = arith.addf %88, %93 : vector<16x256xf32>
      %95 = vector.extract_strided_slice %1 {offsets = [0, 5], sizes = [16, 1], strides = [1, 1]} : vector<16x8xf32> to vector<16x1xf32>
      %96 = vector.extract_strided_slice %63 {offsets = [5, 0], sizes = [1, 256], strides = [1, 1]} : vector<8x256xf32> to vector<1x256xf32>
      %97 = vector.broadcast %95 : vector<16x1xf32> to vector<16x256xf32>
      %98 = vector.broadcast %96 : vector<1x256xf32> to vector<16x256xf32>
      %99 = arith.mulf %97, %98 : vector<16x256xf32>
      %100 = arith.addf %94, %99 : vector<16x256xf32>
      %101 = vector.extract_strided_slice %1 {offsets = [0, 6], sizes = [16, 1], strides = [1, 1]} : vector<16x8xf32> to vector<16x1xf32>
      %102 = vector.extract_strided_slice %63 {offsets = [6, 0], sizes = [1, 256], strides = [1, 1]} : vector<8x256xf32> to vector<1x256xf32>
      %103 = vector.broadcast %101 : vector<16x1xf32> to vector<16x256xf32>
      %104 = vector.broadcast %102 : vector<1x256xf32> to vector<16x256xf32>
      %105 = arith.mulf %103, %104 : vector<16x256xf32>
      %106 = arith.addf %100, %105 : vector<16x256xf32>
      %107 = vector.extract_strided_slice %1 {offsets = [0, 7], sizes = [16, 1], strides = [1, 1]} : vector<16x8xf32> to vector<16x1xf32>
      %108 = vector.extract_strided_slice %63 {offsets = [7, 0], sizes = [1, 256], strides = [1, 1]} : vector<8x256xf32> to vector<1x256xf32>
      %109 = vector.broadcast %107 : vector<16x1xf32> to vector<16x256xf32>
      %110 = vector.broadcast %108 : vector<1x256xf32> to vector<16x256xf32>
      %111 = arith.mulf %109, %110 : vector<16x256xf32>
      %112 = arith.addf %106, %111 : vector<16x256xf32>
      %113 = vector.broadcast %2 : vector<16x1xf32> to vector<16x256xf32>
      %114 = arith.addf %112, %113 : vector<16x256xf32>
      %c0_26 = arith.constant 0 : index
      %c0_27 = arith.constant 0 : index
      %c0_28 = arith.constant 0 : index
      %115 = vector.load %arg6[%c0_26, %c0_27, %c0_28] : memref<1x16x256xf32, #tpu.memory_space<vmem>>, vector<1x16x256xf32>
      %116 = vector.shape_cast %115 : vector<1x16x256xf32> to vector<16x256xf32>
      %117 = vector.shape_cast %114 : vector<16x256xf32> to vector<1x16x256xf32>
      tpu.vector_store %arg6[%c0_26, %c0_27, %c0_28], %117 {strides = array<i32>} : memref<1x16x256xf32, #tpu.memory_space<vmem>>, vector<1x16x256xf32>,
    } else {
    }
    return
  }
  func.func @transform_0(%arg0: i32, %arg1: i32) -> (i32, i32, i32) {
    %c0_i32 = arith.constant 0 : i32
    %c0_i32_0 = arith.constant 0 : i32
    %c0_i32_1 = arith.constant 0 : i32
    return %arg0, %c0_i32, %c0_i32_0 : i32, i32, i32
  }
  func.func @transform_1(%arg0: i32, %arg1: i32) -> (i32, i32) {
    %c0_i32 = arith.constant 0 : i32
    %c0_i32_0 = arith.constant 0 : i32
    %c0_i32_1 = arith.constant 0 : i32
    return %c0_i32, %c0_i32_0 : i32, i32
  }
  func.func @transform_2(%arg0: i32, %arg1: i32) -> (i32, i32) {
    %c0_i32 = arith.constant 0 : i32
    %c0_i32_0 = arith.constant 0 : i32
    %c0_i32_1 = arith.constant 0 : i32
    return %c0_i32, %c0_i32_0 : i32, i32
  }
  func.func @transform_3(%arg0: i32, %arg1: i32) -> (i32, i32) {
    %c0_i32 = arith.constant 0 : i32
    %c0_i32_0 = arith.constant 0 : i32
    %c0_i32_1 = arith.constant 0 : i32
    return %c0_i32, %c0_i32_0 : i32, i32
  }
  func.func @transform_4(%arg0: i32, %arg1: i32) -> (i32, i32, i32) {
    %c0_i32 = arith.constant 0 : i32
    %c0_i32_0 = arith.constant 0 : i32
    return %arg0, %c0_i32, %arg1 : i32, i32, i32
  }
}

</mosaic_0001>

<bundles_post_ra>
// kernel: tpu_custom_call.1
= control target key start
LH: loop header
LB: loop body
LE: loop exit
PB: predicated region body
PF: predicated region fallthrough
CT: control target
= control target key end

     0   :  { %9 = vsyncpa [#allocation3], 0  ;;  %s1870_s0 = inlined_call_operand.vmem [shape: f32[1,8,450], index: 0, kind: input, shape index: {}]   ;;  %s1871_s1 = inlined_call_operand.vmem [shape: f32[8,9], index: 1, kind: input, shape index: {}]   ;;  %s1872_s2 = inlined_call_operand.vmem [shape: f32[16,8], index: 2, kind: input, shape index: {}]   ;;  %s1873_s3 = inlined_call_operand.vmem [shape: f32[16,1], index: 3, kind: input, shape index: {}]   ;;  %s1874_s4 = inlined_call_operand.hbm [shape: f32[1,16,512], index: 4, kind: output, shape index: {}]  }
   0x1   :  { %11 = vsyncpa [#allocation3 + $0x1], 0  ;;  %s1431_s15 = smov 0   ;;  %s1433_s16 = smov 0  }
   0x2   :  { %s1435_s17 = smov 0   ;;  %s1437_s18 = smov 0  }
   0x3   :  { %s1439_s19 = smov 0   ;;  %s1441_s20 = smov 0  }
   0x4 LB: > { %s1127_s21 = sadd.s32 4294967295, %s1366_s20   ;;  %s1128_s22 = sadd.s32 4294967294, %s1366_s20   ;;  %s1366_s20 = sphi %s1441_s20, %s17_s20   ;;  %s1362_s19 = sphi %s1439_s19, %s1881_s19   ;;  %s1358_s18 = sphi %s1437_s18, %s1880_s18   ;;  %s1354_s17 = sphi %s1435_s17, %s1879_s17   ;;  %s1350_s16 = sphi %s1433_s16, %s1878_s16   ;;  %s1346_s15 = sphi %s1431_s15, %s1877_s15  }
   0x5   : > { %s26_s23 = sadd.s32 1, %s1362_s19  ;;  %s127_s24 = sadd.s32 1, %s1354_s17 }
   0x6   : > { %p27_p0 = scmp.ge.s32.totalorder %s26_s23, 2  ;;  %p137_p1 = scmp.ne.s32.totalorder %s1354_s17, %s1350_s16 }
   0x7   : > { %p138_p2 = scmp.eq.s32.totalorder %s1127_s21, 1  ;;  %p143_p3 = scmp.ne.s32.totalorder %s1350_s16, %s1346_s15 }
   0x8   : > { %s1883_s23 = smov (%p27_p0, %s26_s23), 0  ;;  %p144_p5 = scmp.eq.s32.totalorder %s1128_s22, 1 }
   0x9   : > { %p1471_p4 = por %p138_p2, %p137_p1  ;;  %s123_s26 = ssub.s32 %s1362_s19, %s1883_s23 }
   0xa   : > { %p1131_p6 = scmp.ge.s32.totalorder %s1366_s20, 1  ;;  %p125_p7 = scmp.eq.s32.totalorder %s123_s26, 0 }
   0xb   : > { %p1478_p8 = por %p144_p5, %p143_p3  ;;  %p179_p9 = scmp.lt.s32.totalorder %s1366_s20, 3 }
   0xc   : > { %s1484_s28 = scalar_select %p125_p7, %s1354_s17, %s127_s24  }
   0xd   : > { %p180_p10 = pnand %p1131_p6, %p179_p9 }
   0xe   : > { %s202_s29 = sand.u32 (!%p180_p10), 1, %s1350_s16   ;;  %p1133_p11 = scmp.ne.s32.totalorder (!%p180_p10), %s1358_s18, 0 }
   0xf   : > { %183 = sbr.rel (%p180_p10) target bundleno = 895 (0x37f), region = 36  ;;  %s1132_s10 = sshll.u32 (!%p180_p10), %s202_s29, 5 }
  0x10   : > { %s1514_s21 = scalar_lea.vmem (!%p180_p10), [#allocation2], %s1132_s10 }
  0x14   : > { %v1490_v0 = vld [vmem:[%s1871_s1] sm:$0xff]  ;;  %v1500_v2 = vld [vmem:[%s1872_s2 + $0x8] sm:$0xff]  ;;  %219 = sbr.rel (%p1133_p11) target bundleno = 386 (0x182), region = 40  ;;  %s1377_s26 = smov (!%p1133_p11), 126  }
  0x15   : > { %v1495_v1 = vld [vmem:[%s1872_s2] sm:$0xff]  ;;  %v1512_v4 = vld [vmem:[%s1873_s3 + $0x8] sm:$0xff]  ;;  %s1378_s8 = smov (!%p1133_p11), 127   ;;  %s1379_s9 = smov (!%p1133_p11), 110  }
  0x16   : > { %v1507_v3 = vld [vmem:[%s1873_s3] sm:$0xff]  ;;  %s1380_s10 = smov (!%p1133_p11), 109   ;;  %s1381_s11 = smov (!%p1133_p11), 92  }
  0x17   : > { %s1382_s12 = smov (!%p1133_p11), 90   ;;  %s1383_s13 = smov (!%p1133_p11), 108  }
  0x18   : > { %s1384_s14 = smov (!%p1133_p11), 91  }
  0x19   : > { %v1368_v5 = vmov 3   ;;  %v1369_v6 = vmov 1   ;;  %v1370_v7 = vmov 2   ;;  %v1371_v8 = vmov 5   ;;  %v1540_v14 = vld [vmem:[%s1870_s0 + $0x10] sm:$0xff]  ;;  %v1546_v17 = vld [vmem:[%s1870_s0] sm:$0xff] }
  0x1a   : > { %1236 = vset.pattern.permute.xlu1 %v1368_v5  ;;  %1234 = vset.pattern.permute.xlu0 %v1369_v6  ;;  %v1372_v9 = vmov 0   ;;  %v1373_v10 = vmov 4   ;;  %v1374_v11 = vmov 7   ;;  %v1375_v12 = vmov 6   ;;  %v1551_v18 = vld [vmem:[%s1870_s0 + $0x8] sm:$0xff] }
  0x1b   : > { %281 = vperm.xlu1 %1236, %v1490_v0   ;;  %235 = vperm.xlu0 %1234, %v1490_v0   ;;  %v1376_v13 = vmov 8   ;;  %vm250_vm0 = vcmask 1039360   ;;  %vm273_vm1 = vcmask 1031168   ;;  %vm296_vm2 = vcmask 900096  }
  0x1c   : > { %1235 = vset.pattern.permute.xlu2 %v1370_v7  ;;  %vm319_vm3 = vcmask 891904   ;;  %vm342_vm4 = vcmask 883712   ;;  %vm365_vm5 = vcmask 752640   ;;  %vm388_vm6 = vcmask 744448  }
  0x1d   : > { %258 = vperm.xlu2 %1235, %v1490_v0   ;;  %vm411_vm7 = vcmask 736256  }
  0x23   : > { %1238 = vset.pattern.permute.xlu0 %v1371_v8  ;;  %1243 = vset.pattern.permute.xlu1 %v1372_v9 }
  0x24   : > { %327 = vperm.xlu0 %1238, %v1490_v0   ;;  %425 = vperm.xlu1 %1243, %v1500_v2  }
  0x25   : > { %1237 = vset.pattern.permute.xlu2 %v1373_v10 }
  0x26   : > { %304 = vperm.xlu2 %1237, %v1490_v0  }
  0x2c   : > { %1240 = vset.pattern.permute.xlu0 %v1374_v11  ;;  %1245 = vset.pattern.permute.xlu1 %v1369_v6 }
  0x2d   : > { %373 = vperm.xlu0 %1240, %v1490_v0   ;;  %443 = vperm.xlu1 %1245, %v1500_v2  }
  0x2e   : > { %1239 = vset.pattern.permute.xlu2 %v1375_v12 }
  0x2f   : > { %350 = vperm.xlu2 %1239, %v1490_v0  }
  0x35   : > { %1241 = vset.pattern.permute.xlu0 %v1372_v9  ;;  %1248 = vset.pattern.permute.xlu1 %v1368_v5 }
  0x36   : > { %224 = vperm.xlu0 %1241, %v1490_v0  }
  0x37   : > { %1242 = vset.pattern.permute.xlu2 %v1376_v13 }
  0x38   : > { %396 = vperm.xlu2 %1242, %v1490_v0  }
  0x3e   : > { %420 = vperm.xlu0 %1241, %v1495_v1  }
  0x40   : > { %1244 = vset.pattern.permute.xlu2 %v1369_v6 }
  0x41   : > { %439 = vperm.xlu2 %1244, %v1495_v1  }
  0x46   : > { %1247 = vset.pattern.permute.xlu0 %v1370_v7 }
  0x49   : > { %1246 = vset.pattern.permute.xlu2 %v1370_v7 }
  0x4a   : > { %457 = vperm.xlu2 %1246, %v1495_v1  }
  0x52   : > { %1249 = vset.pattern.permute.xlu2 %v1368_v5 }
  0x77   : > { %v259_v15 = vpop.permute.xlu2 %258 }
  0x78   : > { %v263_v16 = vmul.f32 %v259_v15, %v1540_v14  ;;  %v262_v26 = vmul.f32 %v259_v15, %v1551_v18  ;;  %v261_v28 = vmul.f32 %v259_v15, %v1546_v17 }
  0x7a   : > { %271 = vrot.lane.b32.xlu0 %v263_v16, %s1377_s26 }
  0x80   : > { %v305_v24 = vpop.permute.xlu2 %304 }
  0x81   : > { %v307_v25 = vmul.f32 %v305_v24, %v1546_v17  ;;  %v309_v33 = vmul.f32 %v305_v24, %v1540_v14  ;;  %v308_v37 = vmul.f32 %v305_v24, %v1551_v18 }
  0x89   : > { %v351_v30 = vpop.permute.xlu2 %350 }
  0x8a   : > { %v353_v31 = vmul.f32 %v351_v30, %v1546_v17  ;;  %v355_v40 = vmul.f32 %v351_v30, %v1540_v14  ;;  %v354_v44 = vmul.f32 %v351_v30, %v1551_v18 }
  0x8d   : > { %v282_v19 = vpop.permute.xlu1 %281  ;;  %v236_v20 = vpop.permute.xlu0 %235 }
  0x8e   : > { %v285_v21 = vmul.f32 %v282_v19, %v1551_v18  ;;  %v238_v22 = vmul.f32 %v236_v20, %v1546_v17  ;;  %v240_v23 = vmul.f32 %v236_v20, %v1540_v14  ;;  %v239_v27 = vmul.f32 %v236_v20, %v1551_v18 }
  0x8f   : > { %v284_v29 = vmul.f32 %v282_v19, %v1546_v17  ;;  %v286_v32 = vmul.f32 %v282_v19, %v1540_v14 }
  0x90   : > { %244 = vrot.lane.b32.xlu1 %v238_v22, %s1378_s8  ;;  %292 = vrot.lane.b32.xlu0 %v285_v21, %s1379_s9 }
  0x91   : > { %248 = vrot.lane.b32.xlu2 %v240_v23, %s1378_s8 }
  0x92   : > { %v397_v34 = vpop.permute.xlu2 %396 }
  0x93   : > { %v399_v35 = vmul.f32 %v397_v34, %v1546_v17  ;;  %v401_v46 = vmul.f32 %v397_v34, %v1540_v14  ;;  %v400_v48 = vmul.f32 %v397_v34, %v1551_v18 }
  0x96   : > { %v328_v36 = vpop.permute.xlu0 %327  ;;  %v1597_v49 = vpop.permute.xlu1 %425 }
  0x97   : > { %v331_v38 = vmul.f32 %v328_v36, %v1551_v18  ;;  %v330_v39 = vmul.f32 %v328_v36, %v1546_v17  ;;  %v332_v43 = vmul.f32 %v328_v36, %v1540_v14 }
  0x98   : > { %246 = vrot.lane.b32.xlu1 %v239_v27, %s1378_s8  ;;  %313 = vrot.lane.b32.xlu0 %v307_v25, %s1380_s10 }
  0x99   : > { %269 = vrot.lane.b32.xlu2 %v262_v26, %s1377_s26 }
  0x9b   : > { %v1602_v50 = vpop.permute.xlu2 %439 }
  0x9f   : > { %v374_v41 = vpop.permute.xlu0 %373  ;;  %v1605_v51 = vpop.permute.xlu1 %443 }
  0xa0   : > { %267 = vrot.lane.b32.xlu1 %v261_v28, %s1377_s26  ;;  %359 = vrot.lane.b32.xlu0 %v353_v31, %s1381_s11  ;;  %v377_v42 = vmul.f32 %v374_v41, %v1551_v18  ;;  %v376_v45 = vmul.f32 %v374_v41, %v1546_v17  ;;  %v378_v47 = vmul.f32 %v374_v41, %v1540_v14 }
  0xa1   : > { %290 = vrot.lane.b32.xlu2 %v284_v29, %s1379_s9 }
  0xa4   : > { %v1608_v53 = vpop.permute.xlu2 %457 }
  0xa8   : > { %294 = vrot.lane.b32.xlu1 %v286_v32, %s1379_s9  ;;  %405 = vrot.lane.b32.xlu0 %v399_v35, %s1382_s12  ;;  %v225_v52 = vpop.permute.xlu0 %224 }
  0xa9   : > { %317 = vrot.lane.b32.xlu2 %v309_v33, %s1380_s10  ;;  %v227_v59 = vmul.f32 %v1546_v17, %v225_v52  ;;  %v228_v61 = vmul.f32 %v1551_v18, %v225_v52 }
  0xb0   : > { %315 = vrot.lane.b32.xlu1 %v308_v37, %s1380_s10  ;;  %461 = vperm.xlu0 %1247, %v1500_v2   ;;  %v1612_v55 = vpop.permute.xlu0 %420 }
  0xb1   : > { %338 = vrot.lane.b32.xlu2 %v331_v38, %s1383_s13 }
  0xb8   : > { %336 = vrot.lane.b32.xlu1 %v330_v39, %s1383_s13  ;;  %1252 = vset.pattern.permute.xlu0 %v1371_v8 }
  0xb9   : > { %363 = vrot.lane.b32.xlu2 %v355_v40, %s1381_s11  ;;  %511 = vperm.xlu0 %1252, %v1495_v1  }
  0xc0   : > { %340 = vrot.lane.b32.xlu1 %v332_v43, %s1383_s13 }
  0xc1   : > { %384 = vrot.lane.b32.xlu2 %v377_v42, %s1384_s14  ;;  %1257 = vset.pattern.permute.xlu0 %v1374_v11 }
  0xc2   : > { %551 = vperm.xlu0 %1257, %v1500_v2  }
  0xc8   : > { %361 = vrot.lane.b32.xlu1 %v354_v44, %s1381_s11 }
  0xc9   : > { %479 = vperm.xlu2 %1249, %v1500_v2  }
  0xca   : > { %1260 = vset.pattern.permute.xlu0 %v1372_v9 }
  0xd0   : > { %382 = vrot.lane.b32.xlu1 %v376_v45, %s1384_s14 }
  0xd1   : > { %409 = vrot.lane.b32.xlu2 %v401_v46, %s1382_s12 }
  0xd2   : > { %1251 = vset.pattern.permute.xlu2 %v1373_v10 }
  0xd8   : > { %386 = vrot.lane.b32.xlu1 %v378_v47, %s1384_s14 }
  0xd9   : > { %497 = vperm.xlu2 %1251, %v1500_v2  }
  0xe0   : > { %475 = vperm.xlu1 %1248, %v1495_v1  }
  0xe1   : > { %1254 = vset.pattern.permute.xlu2 %v1375_v12 }
  0xe2   : > { %529 = vperm.xlu2 %1254, %v1495_v1  }
  0xe8   : > { %407 = vrot.lane.b32.xlu1 %v400_v48, %s1382_s12 }
  0xe9   : > { %1250 = vset.pattern.permute.xlu1 %v1373_v10 }
  0xea   : > { %1256 = vset.pattern.permute.xlu2 %v1374_v11 }
  0xeb   : > { %547 = vperm.xlu2 %1256, %v1495_v1   ;;  %v249_v56 = vpop.permute.xlu2 %248 }
  0xec   : > { %v272_v60 = vpop.permute.xlu0 %271 }
  0xf0   : > { %493 = vperm.xlu1 %1250, %v1495_v1  }
  0xf3   : > { %1259 = vset.pattern.permute.xlu2 %v1372_v9  ;;  %v270_v62 = vpop.permute.xlu2 %269 }
  0xf4   : > { %571 = vperm.xlu2 %1259, %v1512_v4   ;;  %v275_v11 = vsel %vm273_vm1, %v270_v62, %v272_v60 }
  0xf8   : > { %1253 = vset.pattern.permute.xlu1 %v1371_v8 }
  0xf9   : > { %515 = vperm.xlu1 %1253, %v1500_v2  }
  0xfb   : > { %v291_v15 = vpop.permute.xlu2 %290 }
 0x101   : > { %1255 = vset.pattern.permute.xlu1 %v1375_v12 }
 0x102   : > { %533 = vperm.xlu1 %1255, %v1500_v2   ;;  %v245_v54 = vpop.permute.xlu1 %244 }
 0x103   : > { %v318_v19 = vpop.permute.xlu2 %317 }
 0x10a   : > { %1258 = vset.pattern.permute.xlu1 %v1372_v9  ;;  %v247_v57 = vpop.permute.xlu1 %246  ;;  %v293_v9 = vpop.permute.xlu0 %292 }
 0x10b   : > { %v251_v58 = vsel %vm250_vm0, %v245_v54, %v247_v57  ;;  %566 = vperm.xlu1 %1258, %v1507_v3   ;;  %v252_v6 = vsel %vm250_vm0, %v247_v57, %v249_v56  ;;  %v339_v20 = vpop.permute.xlu2 %338  ;;  %v297_v30 = vsel %vm296_vm2, %v291_v15, %v293_v9 }
 0x10c   : > { %v255_v63 = vadd.f32 %v251_v58, %v227_v59  ;;  %v256_v10 = vadd.f32 %v252_v6, %v228_v61 }
 0x10e   : > { %v279_v13 = vadd.f32 %v275_v11, %v256_v10 }
 0x112   : > { %v268_v5 = vpop.permute.xlu1 %267  ;;  %v314_v26 = vpop.permute.xlu0 %313 }
 0x113   : > { %v274_v7 = vsel %vm273_vm1, %v268_v5, %v270_v62  ;;  %v364_v22 = vpop.permute.xlu2 %363 }
 0x114   : > { %v278_v8 = vadd.f32 %v274_v7, %v255_v63 }
 0x116   : > { %v301_v33 = vadd.f32 %v297_v30, %v278_v8 }
 0x11a   : > { %v295_v12 = vpop.permute.xlu1 %294  ;;  %v360_v29 = vpop.permute.xlu0 %359 }
 0x11b   : > { %v298_v14 = vsel %vm296_vm2, %v293_v9, %v295_v12  ;;  %v385_v24 = vpop.permute.xlu2 %384 }
 0x11c   : > { %v302_v16 = vadd.f32 %v298_v14, %v279_v13 }
 0x122   : > { %v316_v17 = vpop.permute.xlu1 %315  ;;  %v406_v44 = vpop.permute.xlu0 %405 }
 0x123   : > { %v1619_v27 = vpop.permute.xlu2 %479  ;;  %v321_v31 = vsel %vm319_vm3, %v316_v17, %v318_v19  ;;  %v320_v32 = vsel %vm319_vm3, %v314_v26, %v316_v17 }
 0x124   : > { %v325_v37 = vadd.f32 %v321_v31, %v302_v16  ;;  %v324_v38 = vadd.f32 %v320_v32, %v301_v33 }
 0x12a   : > { %v337_v18 = vpop.permute.xlu1 %336  ;;  %v462_v7 = vpop.permute.xlu0 %461 }
 0x12b   : > { %v343_v35 = vsel %vm342_vm4, %v337_v18, %v339_v20  ;;  %v410_v39 = vpop.permute.xlu2 %409 }
 0x12c   : > { %v347_v42 = vadd.f32 %v343_v35, %v324_v38 }
 0x132   : > { %v341_v21 = vpop.permute.xlu1 %340 }
 0x133   : > { %v344_v36 = vsel %vm342_vm4, %v339_v20, %v341_v21  ;;  %v498_v59 = vpop.permute.xlu2 %497 }
 0x134   : > { %v348_v43 = vadd.f32 %v344_v36, %v325_v37 }
 0x13a   : > { %v362_v23 = vpop.permute.xlu1 %361 }
 0x13b   : > { %v367_v40 = vsel %vm365_vm5, %v362_v23, %v364_v22  ;;  %v366_v41 = vsel %vm365_vm5, %v360_v29, %v362_v23 }
 0x13c   : > { %v371_v47 = vadd.f32 %v367_v40, %v348_v43  ;;  %v370_v48 = vadd.f32 %v366_v41, %v347_v42  ;;  %v530_v21 = vpop.permute.xlu2 %529 }
 0x142   : > { %v383_v25 = vpop.permute.xlu1 %382 }
 0x143   : > { %v389_v45 = vsel %vm388_vm6, %v383_v25, %v385_v24 }
 0x144   : > { %v393_v52 = vadd.f32 %v389_v45, %v370_v48 }
 0x14a   : > { %v387_v28 = vpop.permute.xlu1 %386 }
 0x14b   : > { %v390_v46 = vsel %vm388_vm6, %v385_v24, %v387_v28 }
 0x14c   : > { %v394_v54 = vadd.f32 %v390_v46, %v371_v47  ;;  %v548_v46 = vpop.permute.xlu2 %547 }
 0x152   : > { %v476_v34 = vpop.permute.xlu1 %475 }
 0x15a   : > { %v408_v56 = vpop.permute.xlu1 %407 }
 0x15b   : > { %v412_v57 = vsel %vm411_vm7, %v406_v44, %v408_v56  ;;  %v413_v58 = vsel %vm411_vm7, %v408_v56, %v410_v39 }
 0x15c   : > { %v1622_v60 = vadd.f32 %v412_v57, %v393_v52  ;;  %v1624_v61 = vadd.f32 %v413_v58, %v394_v54 }
 0x15e   : > { %v428_v62 = vperm.slane %v1622_v60, 0  ;;  %v429_v63 = vperm.slane %v1624_v61, 0  ;;  %v446_v5 = vperm.slane %v1622_v60, 1  ;;  %v447_v6 = vperm.slane %v1624_v61, 1 }
 0x15f   : > { %v464_v8 = vperm.slane %v1622_v60, 2  ;;  %v465_v10 = vperm.slane %v1624_v61, 2  ;;  %v482_v22 = vperm.slane %v1622_v60, 3  ;;  %v500_v38 = vperm.slane %v1622_v60, 4 }
 0x160   : > { %v430_v11 = vmul.f32 %v428_v62, %v1612_v55  ;;  %v431_v9 = vmul.f32 %v429_v63, %v1612_v55  ;;  %v448_v12 = vmul.f32 %v446_v5, %v1602_v50  ;;  %v449_v13 = vmul.f32 %v447_v6, %v1602_v50 }
 0x161   : > { %v432_v17 = vmul.f32 %v428_v62, %v1597_v49  ;;  %v433_v19 = vmul.f32 %v429_v63, %v1597_v49  ;;  %v466_v18 = vmul.f32 %v464_v8, %v1608_v53  ;;  %v467_v20 = vmul.f32 %v465_v10, %v1608_v53  ;;  %v512_v49 = vpop.permute.xlu0 %511 }
 0x162   : > { %v494_v14 = vpop.permute.xlu1 %493  ;;  %v452_v15 = vadd.f32 %v448_v12, %v430_v11  ;;  %v453_v16 = vadd.f32 %v449_v13, %v431_v9  ;;  %v483_v55 = vperm.slane %v1624_v61, 3  ;;  %v450_v23 = vmul.f32 %v446_v5, %v1605_v51 }
 0x163   : > { %v451_v50 = vmul.f32 %v447_v6, %v1605_v51  ;;  %v468_v29 = vmul.f32 %v464_v8, %v462_v7  ;;  %v469_v30 = vmul.f32 %v465_v10, %v462_v7  ;;  %v484_v31 = vmul.f32 %v482_v22, %v476_v34 }
 0x164   : > { %v470_v24 = vadd.f32 %v466_v18, %v452_v15  ;;  %v471_v25 = vadd.f32 %v467_v20, %v453_v16  ;;  %v454_v26 = vadd.f32 %v450_v23, %v432_v17  ;;  %v485_v32 = vmul.f32 %v483_v55, %v476_v34 }
 0x165   : > { %v455_v28 = vadd.f32 %v451_v50, %v433_v19  ;;  %v501_v39 = vperm.slane %v1624_v61, 4  ;;  %v486_v51 = vmul.f32 %v482_v22, %v1619_v27  ;;  %v487_v40 = vmul.f32 %v483_v55, %v1619_v27  ;;  %v572_v22 = vpop.permute.xlu2 %571 }
 0x166   : > { %v472_v53 = vadd.f32 %v468_v29, %v454_v26  ;;  %v488_v36 = vadd.f32 %v484_v31, %v470_v24  ;;  %v489_v37 = vadd.f32 %v485_v32, %v471_v25  ;;  %v502_v41 = vmul.f32 %v500_v38, %v494_v14 }
 0x167   : > { %v473_v35 = vadd.f32 %v469_v30, %v455_v28  ;;  %v503_v42 = vmul.f32 %v501_v39, %v494_v14  ;;  %v518_v43 = vperm.slane %v1622_v60, 5  ;;  %v519_v44 = vperm.slane %v1624_v61, 5 }
 0x168   : > { %v490_v34 = vadd.f32 %v486_v51, %v472_v53  ;;  %v506_v47 = vadd.f32 %v502_v41, %v488_v36  ;;  %v504_v52 = vmul.f32 %v500_v38, %v498_v59  ;;  %v505_v54 = vmul.f32 %v501_v39, %v498_v59 }
 0x169   : > { %v491_v45 = vadd.f32 %v487_v40, %v473_v35  ;;  %v507_v48 = vadd.f32 %v503_v42, %v489_v37  ;;  %v520_v58 = vmul.f32 %v518_v43, %v512_v49  ;;  %v521_v62 = vmul.f32 %v519_v44, %v512_v49  ;;  %v552_v10 = vpop.permute.xlu0 %551 }
 0x16a   : > { %v536_v63 = vperm.slane %v1622_v60, 6  ;;  %v537_v27 = vperm.slane %v1624_v61, 6  ;;  %v554_v5 = vperm.slane %v1622_v60, 7  ;;  %v555_v6 = vperm.slane %v1624_v61, 7 }
 0x16b   : > { %v516_v33 = vpop.permute.xlu1 %515  ;;  %v508_v7 = vadd.f32 %v504_v52, %v490_v34  ;;  %v509_v8 = vadd.f32 %v505_v54, %v491_v45  ;;  %v524_v9 = vadd.f32 %v520_v58, %v506_v47  ;;  %v525_v12 = vadd.f32 %v521_v62, %v507_v48 }
 0x16c   : > { %v522_v56 = vmul.f32 %v518_v43, %v516_v33  ;;  %v523_v57 = vmul.f32 %v519_v44, %v516_v33  ;;  %v538_v16 = vmul.f32 %v536_v63, %v530_v21  ;;  %v539_v17 = vmul.f32 %v537_v27, %v530_v21 }
 0x16d   : > { %v558_v19 = vmul.f32 %v554_v5, %v552_v10  ;;  %v559_v18 = vmul.f32 %v555_v6, %v552_v10  ;;  %v556_v24 = vmul.f32 %v554_v5, %v548_v46  ;;  %v557_v25 = vmul.f32 %v555_v6, %v548_v46 }
 0x16e   : > { %v526_v13 = vadd.f32 %v522_v56, %v508_v7  ;;  %v527_v59 = vadd.f32 %v523_v57, %v509_v8  ;;  %v542_v61 = vadd.f32 %v538_v16, %v524_v9  ;;  %v543_v55 = vadd.f32 %v539_v17, %v525_v12 }
 0x170   : > { %v560_v29 = vadd.f32 %v556_v24, %v542_v61  ;;  %v561_v30 = vadd.f32 %v557_v25, %v543_v55 }
 0x174   : > { %v534_v11 = vpop.permute.xlu1 %533 }
 0x175   : > { %v540_v14 = vmul.f32 %v536_v63, %v534_v11  ;;  %v541_v15 = vmul.f32 %v537_v27, %v534_v11 }
 0x177   : > { %v544_v20 = vadd.f32 %v540_v14, %v526_v13  ;;  %v545_v60 = vadd.f32 %v541_v15, %v527_v59 }
 0x179   : > { %v562_v23 = vadd.f32 %v558_v19, %v544_v20  ;;  %v563_v50 = vadd.f32 %v559_v18, %v545_v60 }
 0x17b   : > { %v576_v26 = vadd.f32 %v572_v22, %v562_v23  ;;  %v577_v28 = vadd.f32 %v572_v22, %v563_v50 }
 0x17d   : > { %580 = vst [vmem:[%s1514_s21 + $0x10] sm:$0xff] %v576_v26  ;;  %v567_v21 = vpop.permute.xlu1 %566 }
 0x17e   : > { %581 = vst [vmem:[%s1514_s21 + $0x18] sm:$0xff] %v577_v28  ;;  %v574_v49 = vadd.f32 %v567_v21, %v560_v29  ;;  %v575_v31 = vadd.f32 %v567_v21, %v561_v30 }
 0x180   : > { %578 = vst [vmem:[%s1514_s21] sm:$0xff] %v574_v49 }
 0x181   : > { %579 = vst [vmem:[%s1514_s21 + $0x8] sm:$0xff] %v575_v31 }
 0x182 PF: > { %p1134_p12 = scmp.ne.s32.totalorder %s1358_s18, 1 }
 0x183   : > { %s1394_s26 = smov (!%p1134_p12), 126   ;;  %s1395_s8 = smov (!%p1134_p12), 110  }
 0x184   : > { %585 = sbr.rel (%p1134_p12) target bundleno = 878 (0x36e), region = 44  ;;  %s1396_s9 = smov (!%p1134_p12), 127  }
 0x185   : > { %s1397_s10 = smov (!%p1134_p12), 109   ;;  %s1398_s11 = smov (!%p1134_p12), 92  }
 0x186   : > { %s1399_s12 = smov (!%p1134_p12), 90   ;;  %s1400_s13 = smov (!%p1134_p12), 108  }
 0x187   : > { %s1401_s14 = smov (!%p1134_p12), 91   ;;  %s1402_s22 = smov (!%p1134_p12), 112  }
 0x189   : > { %v1385_v32 = vmov 3   ;;  %v1386_v33 = vmov 1   ;;  %v1387_v53 = vmov 2   ;;  %v1388_v35 = vmov 5   ;;  %v1682_v40 = vld [vmem:[%s1870_s0 + $0x18] sm:$0xff]  ;;  %v1693_v43 = vld [vmem:[%s1870_s0 + $0x10] sm:$0xff] }
 0x18a   : > { %1263 = vset.pattern.permute.xlu1 %v1385_v32  ;;  %1261 = vset.pattern.permute.xlu0 %v1386_v33  ;;  %v1389_v36 = vmov 0   ;;  %v1390_v37 = vmov 4   ;;  %v1391_v38 = vmov 7   ;;  %v1392_v39 = vmov 6  }
 0x18b   : > { %651 = vperm.xlu1 %1263, %v1490_v0   ;;  %601 = vperm.xlu0 %1261, %v1490_v0   ;;  %v1393_v51 = vmov 8   ;;  %vm616_vm8 = vcmask 1039360   ;;  %vm641_vm9 = vcmask 1031168   ;;  %vm666_vm10 = vcmask 900096  }
 0x18c   : > { %1262 = vset.pattern.permute.xlu2 %v1387_v53  ;;  %vm691_vm11 = vcmask 891904   ;;  %vm716_vm12 = vcmask 883712   ;;  %vm741_vm13 = vcmask 752640   ;;  %vm766_vm14 = vcmask 744448  }
 0x18d   : > { %626 = vperm.xlu2 %1262, %v1490_v0   ;;  %vm791_vm15 = vcmask 736256   ;;  %vm1020_vm0 = vcmask 916480  }
 0x193   : > { %1265 = vset.pattern.permute.xlu0 %v1388_v35  ;;  %1270 = vset.pattern.permute.xlu1 %v1389_v36 }
 0x194   : > { %701 = vperm.xlu0 %1265, %v1490_v0   ;;  %807 = vperm.xlu1 %1270, %v1500_v2  }
 0x195   : > { %1264 = vset.pattern.permute.xlu2 %v1390_v37 }
 0x196   : > { %676 = vperm.xlu2 %1264, %v1490_v0  }
 0x19c   : > { %1267 = vset.pattern.permute.xlu0 %v1391_v38  ;;  %1272 = vset.pattern.permute.xlu1 %v1386_v33 }
 0x19d   : > { %751 = vperm.xlu0 %1267, %v1490_v0   ;;  %830 = vperm.xlu1 %1272, %v1500_v2  }
 0x19e   : > { %1266 = vset.pattern.permute.xlu2 %v1392_v39 }
 0x19f   : > { %726 = vperm.xlu2 %1266, %v1490_v0  }
 0x1a5   : > { %1268 = vset.pattern.permute.xlu0 %v1389_v36  ;;  %1275 = vset.pattern.permute.xlu1 %v1385_v32 }
 0x1a6   : > { %591 = vperm.xlu0 %1268, %v1490_v0  }
 0x1a7   : > { %1269 = vset.pattern.permute.xlu2 %v1393_v51 }
 0x1a8   : > { %776 = vperm.xlu2 %1269, %v1490_v0   ;;  %v1688_v0 = vld [vmem:[%s1870_s0 + $0x8] sm:$0xff] }
 0x1ae   : > { %802 = vperm.xlu0 %1268, %v1495_v1  }
 0x1b0   : > { %1271 = vset.pattern.permute.xlu2 %v1386_v33 }
 0x1b1   : > { %826 = vperm.xlu2 %1271, %v1495_v1  }
 0x1b6   : > { %1274 = vset.pattern.permute.xlu0 %v1387_v53 }
 0x1b9   : > { %1273 = vset.pattern.permute.xlu2 %v1387_v53 }
 0x1ba   : > { %849 = vperm.xlu2 %1273, %v1495_v1  }
 0x1c2   : > { %1276 = vset.pattern.permute.xlu2 %v1385_v32 }
 0x1e7   : > { %v627_v41 = vpop.permute.xlu2 %626 }
 0x1e8   : > { %v631_v42 = vmul.f32 %v627_v41, %v1682_v40  ;;  %v630_v54 = vmul.f32 %v627_v41, %v1693_v43  ;;  %v629_v58 = vmul.f32 %v627_v41, %v1688_v0 }
 0x1ea   : > { %639 = vrot.lane.b32.xlu0 %v631_v42, %s1394_s26 }
 0x1f0   : > { %v677_v48 = vpop.permute.xlu2 %676 }
 0x1f1   : > { %v679_v52 = vmul.f32 %v677_v48, %v1688_v0  ;;  %v681_v7 = vmul.f32 %v677_v48, %v1682_v40  ;;  %v680_v10 = vmul.f32 %v677_v48, %v1693_v43 }
 0x1f9   : > { %v727_v57 = vpop.permute.xlu2 %726 }
 0x1fa   : > { %v729_v62 = vmul.f32 %v727_v57, %v1688_v0  ;;  %v731_v12 = vmul.f32 %v727_v57, %v1682_v40  ;;  %v730_v15 = vmul.f32 %v727_v57, %v1693_v43 }
 0x1fd   : > { %v652_v44 = vpop.permute.xlu1 %651  ;;  %v602_v34 = vpop.permute.xlu0 %601 }
 0x1fe   : > { %v655_v45 = vmul.f32 %v652_v44, %v1693_v43  ;;  %v604_v46 = vmul.f32 %v602_v34, %v1688_v0  ;;  %v606_v47 = vmul.f32 %v602_v34, %v1682_v40  ;;  %v605_v56 = vmul.f32 %v602_v34, %v1693_v43 }
 0x1ff   : > { %v654_v63 = vmul.f32 %v652_v44, %v1688_v0  ;;  %v656_v5 = vmul.f32 %v652_v44, %v1682_v40 }
 0x200   : > { %662 = vrot.lane.b32.xlu0 %v655_v45, %s1395_s8  ;;  %610 = vrot.lane.b32.xlu1 %v604_v46, %s1396_s9 }
 0x201   : > { %614 = vrot.lane.b32.xlu2 %v606_v47, %s1396_s9 }
 0x202   : > { %v777_v27 = vpop.permute.xlu2 %776 }
 0x203   : > { %v779_v6 = vmul.f32 %v777_v27, %v1688_v0  ;;  %v781_v17 = vmul.f32 %v777_v27, %v1682_v40  ;;  %v780_v18 = vmul.f32 %v777_v27, %v1693_v43 }
 0x206   : > { %v702_v8 = vpop.permute.xlu0 %701  ;;  %v1739_v20 = vpop.permute.xlu1 %807 }
 0x207   : > { %v705_v11 = vmul.f32 %v702_v8, %v1693_v43  ;;  %v704_v9 = vmul.f32 %v702_v8, %v1688_v0  ;;  %v706_v14 = vmul.f32 %v702_v8, %v1682_v40 }
 0x208   : > { %612 = vrot.lane.b32.xlu1 %v605_v56, %s1396_s9  ;;  %685 = vrot.lane.b32.xlu0 %v679_v52, %s1397_s10 }
 0x209   : > { %637 = vrot.lane.b32.xlu2 %v630_v54, %s1394_s26 }
 0x20b   : > { %v1742_v60 = vpop.permute.xlu2 %826 }
 0x20f   : > { %v752_v13 = vpop.permute.xlu0 %751  ;;  %v1747_v22 = vpop.permute.xlu1 %830 }
 0x210   : > { %635 = vrot.lane.b32.xlu1 %v629_v58, %s1394_s26  ;;  %735 = vrot.lane.b32.xlu0 %v729_v62, %s1398_s11  ;;  %v755_v59 = vmul.f32 %v752_v13, %v1693_v43  ;;  %v754_v16 = vmul.f32 %v752_v13, %v1688_v0  ;;  %v756_v19 = vmul.f32 %v752_v13, %v1682_v40 }
 0x211   : > { %660 = vrot.lane.b32.xlu2 %v654_v63, %s1395_s8 }
 0x214   : > { %v1750_v61 = vpop.permute.xlu2 %849 }
 0x218   : > { %664 = vrot.lane.b32.xlu1 %v656_v5, %s1395_s8  ;;  %785 = vrot.lane.b32.xlu0 %v779_v6, %s1399_s12  ;;  %v592_v55 = vpop.permute.xlu0 %591 }
 0x219   : > { %689 = vrot.lane.b32.xlu2 %v681_v7, %s1397_s10  ;;  %v594_v25 = vmul.f32 %v592_v55, %v1688_v0  ;;  %v595_v28 = vmul.f32 %v592_v55, %v1693_v43  ;;  %v596_v34 = vmul.f32 %v592_v55, %v1682_v40 }
 0x220   : > { %687 = vrot.lane.b32.xlu1 %v680_v10, %s1397_s10  ;;  %853 = vperm.xlu0 %1274, %v1500_v2   ;;  %v1754_v50 = vpop.permute.xlu0 %802 }
 0x221   : > { %712 = vrot.lane.b32.xlu2 %v705_v11, %s1400_s13 }
 0x228   : > { %710 = vrot.lane.b32.xlu1 %v704_v9, %s1400_s13  ;;  %1279 = vset.pattern.permute.xlu0 %v1388_v35 }
 0x229   : > { %739 = vrot.lane.b32.xlu2 %v731_v12, %s1398_s11  ;;  %918 = vperm.xlu0 %1279, %v1495_v1  }
 0x230   : > { %714 = vrot.lane.b32.xlu1 %v706_v14, %s1400_s13 }
 0x231   : > { %762 = vrot.lane.b32.xlu2 %v755_v59, %s1401_s14  ;;  %1284 = vset.pattern.permute.xlu0 %v1391_v38 }
 0x232   : > { %968 = vperm.xlu0 %1284, %v1500_v2  }
 0x238   : > { %737 = vrot.lane.b32.xlu1 %v730_v15, %s1398_s11 }
 0x239   : > { %876 = vperm.xlu2 %1276, %v1500_v2  }
 0x23a   : > { %1287 = vset.pattern.permute.xlu0 %v1389_v36 }
 0x240   : > { %760 = vrot.lane.b32.xlu1 %v754_v16, %s1401_s14 }
 0x241   : > { %789 = vrot.lane.b32.xlu2 %v781_v17, %s1399_s12 }
 0x242   : > { %1278 = vset.pattern.permute.xlu2 %v1390_v37 }
 0x248   : > { %764 = vrot.lane.b32.xlu1 %v756_v19, %s1401_s14 }
 0x249   : > { %899 = vperm.xlu2 %1278, %v1500_v2  }
 0x250   : > { %872 = vperm.xlu1 %1275, %v1495_v1  }
 0x251   : > { %1281 = vset.pattern.permute.xlu2 %v1392_v39 }
 0x252   : > { %941 = vperm.xlu2 %1281, %v1495_v1  }
 0x258   : > { %787 = vrot.lane.b32.xlu1 %v780_v18, %s1399_s12 }
 0x259   : > { %1277 = vset.pattern.permute.xlu1 %v1390_v37 }
 0x25a   : > { %1283 = vset.pattern.permute.xlu2 %v1391_v38 }
 0x25b   : > { %964 = vperm.xlu2 %1283, %v1495_v1   ;;  %v615_v23 = vpop.permute.xlu2 %614 }
 0x25c   : > { %v640_v29 = vpop.permute.xlu0 %639  ;;  %v624_v47 = vadd.f32 %v615_v23, %v596_v34 }
 0x25e   : > { %v649_v48 = vadd.f32 %v640_v29, %v624_v47 }
 0x260   : > { %895 = vperm.xlu1 %1277, %v1495_v1  }
 0x263   : > { %1286 = vset.pattern.permute.xlu2 %v1389_v36  ;;  %v638_v26 = vpop.permute.xlu2 %637 }
 0x264   : > { %993 = vperm.xlu2 %1286, %v1512_v4   ;;  %v643_v33 = vsel %vm641_vm9, %v638_v26, %v640_v29 }
 0x268   : > { %1280 = vset.pattern.permute.xlu1 %v1388_v35 }
 0x269   : > { %922 = vperm.xlu1 %1280, %v1500_v2  }
 0x26b   : > { %v661_v53 = vpop.permute.xlu2 %660 }
 0x271   : > { %1282 = vset.pattern.permute.xlu1 %v1392_v39 }
 0x272   : > { %945 = vperm.xlu1 %1282, %v1500_v2   ;;  %v611_v1 = vpop.permute.xlu1 %610  ;;  %v663_v35 = vpop.permute.xlu0 %662 }
 0x273   : > { %v690_v51 = vpop.permute.xlu2 %689  ;;  %v667_v27 = vsel %vm666_vm10, %v661_v53, %v663_v35 }
 0x27a   : > { %1285 = vset.pattern.permute.xlu1 %v1389_v36  ;;  %v613_v4 = vpop.permute.xlu1 %612  ;;  %v686_v52 = vpop.permute.xlu0 %685 }
 0x27b   : > { %v617_v24 = vsel %vm616_vm8, %v611_v1, %v613_v4  ;;  %988 = vperm.xlu1 %1285, %v1507_v3   ;;  %v618_v21 = vsel %vm616_vm8, %v613_v4, %v615_v23  ;;  %v713_v42 = vpop.permute.xlu2 %712 }
 0x27c   : > { %v622_v30 = vadd.f32 %v617_v24, %v594_v25  ;;  %v623_v32 = vadd.f32 %v618_v21, %v595_v28 }
 0x27e   : > { %v648_v36 = vadd.f32 %v643_v33, %v623_v32 }
 0x282   : > { %v636_v2 = vpop.permute.xlu1 %635  ;;  %v736_v63 = vpop.permute.xlu0 %735 }
 0x283   : > { %v642_v49 = vsel %vm641_vm9, %v636_v2, %v638_v26  ;;  %v740_v43 = vpop.permute.xlu2 %739 }
 0x284   : > { %v647_v31 = vadd.f32 %v642_v49, %v622_v30 }
 0x286   : > { %v672_v7 = vadd.f32 %v667_v27, %v647_v31 }
 0x28a   : > { %v665_v37 = vpop.permute.xlu1 %664  ;;  %v786_v4 = vpop.permute.xlu0 %785 }
 0x28b   : > { %v668_v3 = vsel %vm666_vm10, %v663_v35, %v665_v37  ;;  %v763_v45 = vpop.permute.xlu2 %762  ;;  %v674_v54 = vadd.f32 %v665_v37, %v649_v48 }
 0x28c   : > { %v673_v38 = vadd.f32 %v668_v3, %v648_v36 }
 0x28d   : > { %v699_v58 = vadd.f32 %v690_v51, %v674_v54 }
 0x292   : > { %v688_v39 = vpop.permute.xlu1 %687 }
 0x293   : > { %v1762_v56 = vpop.permute.xlu2 %876  ;;  %v692_v5 = vsel %vm691_vm11, %v686_v52, %v688_v39  ;;  %v693_v6 = vsel %vm691_vm11, %v688_v39, %v690_v51 }
 0x294   : > { %v697_v12 = vadd.f32 %v692_v5, %v672_v7  ;;  %v698_v13 = vadd.f32 %v693_v6, %v673_v38 }
 0x29a   : > { %v711_v41 = vpop.permute.xlu1 %710 }
 0x29b   : > { %v717_v8 = vsel %vm716_vm12, %v711_v41, %v713_v42  ;;  %v790_v11 = vpop.permute.xlu2 %789 }
 0x29c   : > { %v722_v16 = vadd.f32 %v717_v8, %v697_v12 }
 0x2a2   : > { %v715_v0 = vpop.permute.xlu1 %714 }
 0x2a3   : > { %v724_v62 = vadd.f32 %v715_v0, %v699_v58  ;;  %v718_v10 = vsel %vm716_vm12, %v713_v42, %v715_v0  ;;  %v1773_v21 = vpop.permute.xlu2 %899 }
 0x2a4   : > { %v723_v17 = vadd.f32 %v718_v10, %v698_v13 }
 0x2a5   : > { %v749_v9 = vadd.f32 %v740_v43, %v724_v62 }
 0x2aa   : > { %v738_v44 = vpop.permute.xlu1 %737 }
 0x2ab   : > { %v742_v59 = vsel %vm741_vm13, %v736_v63, %v738_v44  ;;  %v743_v14 = vsel %vm741_vm13, %v738_v44, %v740_v43 }
 0x2ac   : > { %v747_v55 = vadd.f32 %v742_v59, %v722_v16  ;;  %v748_v1 = vadd.f32 %v743_v14, %v723_v17 }
 0x2b2   : > { %v761_v46 = vpop.permute.xlu1 %760 }
 0x2b3   : > { %v767_v19 = vsel %vm766_vm14, %v761_v46, %v763_v45  ;;  %v854_v46 = vpop.permute.xlu0 %853 }
 0x2b4   : > { %v772_v24 = vadd.f32 %v767_v19, %v747_v55 }
 0x2ba   : > { %v765_v57 = vpop.permute.xlu1 %764 }
 0x2bb   : > { %v774_v15 = vadd.f32 %v765_v57, %v749_v9  ;;  %v768_v18 = vsel %vm766_vm14, %v763_v45, %v765_v57 }
 0x2bc   : > { %v773_v25 = vadd.f32 %v768_v18, %v748_v1 }
 0x2bd   : > { %v1767_v23 = vadd.f32 %v790_v11, %v774_v15 }
 0x2bf   : > { %v812_v49 = vperm.slane %v1767_v23, 0  ;;  %v835_v31 = vperm.slane %v1767_v23, 1  ;;  %v858_v43 = vperm.slane %v1767_v23, 2  ;;  %v881_v57 = vperm.slane %v1767_v23, 3 }
 0x2c0   : > { %v904_v10 = vperm.slane %v1767_v23, 4  ;;  %v927_v1 = vperm.slane %v1767_v23, 5 }
 0x2c1   : > { %v815_v3 = vmul.f32 %v812_v49, %v1754_v50  ;;  %v838_v38 = vmul.f32 %v835_v31, %v1742_v60  ;;  %v861_v54 = vmul.f32 %v858_v43, %v1750_v61  ;;  %v818_v63 = vmul.f32 %v812_v49, %v1739_v20 }
 0x2c2   : > { %v1765_v40 = vpop.permute.xlu1 %872  ;;  %v841_v7 = vmul.f32 %v835_v31, %v1747_v22 }
 0x2c3   : > { %v844_v45 = vadd.f32 %v838_v38, %v815_v3 }
 0x2c4   : > { %v847_v55 = vadd.f32 %v841_v7, %v818_v63 }
 0x2c5   : > { %v867_v27 = vadd.f32 %v861_v54, %v844_v45 }
 0x2ca   : > { %v788_v26 = vpop.permute.xlu1 %787 }
 0x2cb   : > { %v792_v28 = vsel %vm791_vm15, %v786_v4, %v788_v26  ;;  %v793_v29 = vsel %vm791_vm15, %v788_v26, %v790_v11 }
 0x2cc   : > { %v1769_v30 = vadd.f32 %v792_v28, %v772_v24  ;;  %v1771_v2 = vadd.f32 %v793_v29, %v773_v25  ;;  %v919_v29 = vpop.permute.xlu0 %918 }
 0x2ce   : > { %v811_v32 = vperm.slane %v1771_v2, 0  ;;  %v834_v33 = vperm.slane %v1771_v2, 1  ;;  %v810_v53 = vperm.slane %v1769_v30, 0  ;;  %v833_v35 = vperm.slane %v1769_v30, 1 }
 0x2cf   : > { %v857_v41 = vperm.slane %v1771_v2, 2  ;;  %v856_v0 = vperm.slane %v1769_v30, 2  ;;  %v880_v48 = vperm.slane %v1771_v2, 3  ;;  %v903_v9 = vperm.slane %v1771_v2, 4 }
 0x2d0   : > { %v814_v36 = vmul.f32 %v811_v32, %v1754_v50  ;;  %v837_v37 = vmul.f32 %v834_v33, %v1742_v60  ;;  %v813_v39 = vmul.f32 %v810_v53, %v1754_v50  ;;  %v836_v51 = vmul.f32 %v833_v35, %v1742_v60  ;;  %v942_v60 = vpop.permute.xlu2 %941 }
 0x2d1   : > { %v860_v47 = vmul.f32 %v857_v41, %v1750_v61  ;;  %v859_v52 = vmul.f32 %v856_v0, %v1750_v61  ;;  %v879_v50 = vperm.slane %v1769_v30, 3  ;;  %v817_v5 = vmul.f32 %v811_v32, %v1739_v20 }
 0x2d2   : > { %v896_v42 = vpop.permute.xlu1 %895  ;;  %v843_v44 = vadd.f32 %v837_v37, %v814_v36  ;;  %v842_v34 = vadd.f32 %v836_v51, %v813_v39  ;;  %v840_v6 = vmul.f32 %v834_v33, %v1747_v22  ;;  %v883_v8 = vmul.f32 %v880_v48, %v1765_v40 }
 0x2d3   : > { %v882_v11 = vmul.f32 %v879_v50, %v1765_v40  ;;  %v884_v61 = vmul.f32 %v881_v57, %v1765_v40  ;;  %v816_v13 = vmul.f32 %v810_v53, %v1739_v20  ;;  %v839_v59 = vmul.f32 %v833_v35, %v1747_v22 }
 0x2d4   : > { %v866_v58 = vadd.f32 %v860_v47, %v843_v44  ;;  %v865_v62 = vadd.f32 %v859_v52, %v842_v34  ;;  %v902_v16 = vperm.slane %v1769_v30, 4  ;;  %v907_v17 = vmul.f32 %v904_v10, %v896_v42 }
 0x2d5   : > { %v890_v19 = vadd.f32 %v884_v61, %v867_v27  ;;  %v846_v18 = vadd.f32 %v840_v6, %v817_v5  ;;  %v906_v24 = vmul.f32 %v903_v9, %v896_v42  ;;  %v926_v40 = vperm.slane %v1771_v2, 5 }
 0x2d6   : > { %v889_v14 = vadd.f32 %v883_v8, %v866_v58  ;;  %v888_v15 = vadd.f32 %v882_v11, %v865_v62  ;;  %v905_v4 = vmul.f32 %v902_v16, %v896_v42  ;;  %v925_v25 = vperm.slane %v1769_v30, 5 }
 0x2d7   : > { %v973_v20 = vperm.slane %v1767_v23, 7  ;;  %v863_v26 = vmul.f32 %v857_v41, %v854_v46  ;;  %v864_v22 = vmul.f32 %v858_v43, %v854_v46  ;;  %v845_v28 = vadd.f32 %v839_v59, %v816_v13 }
 0x2d8   : > { %v911_v49 = vadd.f32 %v905_v4, %v888_v15  ;;  %v912_v31 = vadd.f32 %v906_v24, %v889_v14  ;;  %v913_v32 = vadd.f32 %v907_v17, %v890_v19  ;;  %v950_v33 = vperm.slane %v1767_v23, 6  ;;  %v965_v53 = vpop.permute.xlu2 %964 }
 0x2d9   : > { %v869_v35 = vadd.f32 %v863_v26, %v846_v18  ;;  %v870_v36 = vadd.f32 %v864_v22, %v847_v55  ;;  %v930_v37 = vmul.f32 %v927_v1, %v919_v29  ;;  %v862_v3 = vmul.f32 %v856_v0, %v854_v46 }
 0x2da   : > { %v929_v38 = vmul.f32 %v926_v40, %v919_v29  ;;  %v928_v39 = vmul.f32 %v925_v25, %v919_v29  ;;  %v949_v51 = vperm.slane %v1771_v2, 6  ;;  %v948_v42 = vperm.slane %v1769_v30, 6 }
 0x2db   : > { %v923_v12 = vpop.permute.xlu1 %922  ;;  %v887_v41 = vmul.f32 %v881_v57, %v1762_v56  ;;  %v886_v43 = vmul.f32 %v880_v48, %v1762_v56  ;;  %v868_v44 = vadd.f32 %v862_v3, %v845_v28  ;;  %v976_v34 = vmul.f32 %v973_v20, %v965_v53 }
 0x2dc   : > { %v935_v47 = vadd.f32 %v929_v38, %v912_v31  ;;  %v936_v52 = vadd.f32 %v930_v37, %v913_v32  ;;  %v934_v54 = vadd.f32 %v928_v39, %v911_v49  ;;  %v885_v46 = vmul.f32 %v879_v50, %v1762_v56 }
 0x2dd   : > { %v892_v58 = vadd.f32 %v886_v43, %v869_v35  ;;  %v893_v0 = vadd.f32 %v887_v41, %v870_v36  ;;  %v953_v62 = vmul.f32 %v950_v33, %v942_v60  ;;  %v952_v63 = vmul.f32 %v949_v51, %v942_v60 }
 0x2de   : > { %v951_v27 = vmul.f32 %v948_v42, %v942_v60  ;;  %v971_v5 = vperm.slane %v1769_v30, 7  ;;  %v972_v57 = vperm.slane %v1771_v2, 7  ;;  %v909_v48 = vmul.f32 %v903_v9, %v1773_v21 }
 0x2df   : > { %v910_v6 = vmul.f32 %v904_v10, %v1773_v21  ;;  %v891_v7 = vadd.f32 %v885_v46, %v868_v44  ;;  %v932_v8 = vmul.f32 %v926_v40, %v923_v12  ;;  %v933_v11 = vmul.f32 %v927_v1, %v923_v12  ;;  %v969_v1 = vpop.permute.xlu0 %968 }
 0x2e0   : > { %v958_v61 = vadd.f32 %v952_v63, %v935_v47  ;;  %v959_v13 = vadd.f32 %v953_v62, %v936_v52  ;;  %v957_v59 = vadd.f32 %v951_v27, %v934_v54  ;;  %v908_v14 = vmul.f32 %v902_v16, %v1773_v21 }
 0x2e1   : > { %v915_v56 = vadd.f32 %v909_v48, %v892_v58  ;;  %v931_v50 = vmul.f32 %v925_v25, %v923_v12  ;;  %v916_v60 = vadd.f32 %v910_v6, %v893_v0  ;;  %v975_v30 = vmul.f32 %v972_v57, %v965_v53 }
 0x2e2   : > { %v974_v19 = vmul.f32 %v971_v5, %v965_v53  ;;  %v914_v2 = vadd.f32 %v908_v14, %v891_v7  ;;  %v982_v4 = vadd.f32 %v976_v34, %v959_v13  ;;  %v979_v29 = vmul.f32 %v973_v20, %v969_v1  ;;  %v994_v53 = vpop.permute.xlu2 %993 }
 0x2e3   : > { %v938_v18 = vadd.f32 %v932_v8, %v915_v56  ;;  %v939_v55 = vadd.f32 %v933_v11, %v916_v60  ;;  %v981_v10 = vadd.f32 %v975_v30, %v958_v61  ;;  %v978_v49 = vmul.f32 %v972_v57, %v969_v1 }
 0x2e4   : > { %v946_v45 = vpop.permute.xlu1 %945  ;;  %v980_v24 = vadd.f32 %v974_v19, %v957_v59  ;;  %v937_v40 = vadd.f32 %v931_v50, %v914_v2  ;;  %v977_v31 = vmul.f32 %v971_v5, %v969_v1 }
 0x2e5   : > { %v955_v15 = vmul.f32 %v949_v51, %v946_v45  ;;  %v956_v17 = vmul.f32 %v950_v33, %v946_v45  ;;  %v954_v9 = vmul.f32 %v948_v42, %v946_v45 }
 0x2e7   : > { %v961_v26 = vadd.f32 %v955_v15, %v938_v18  ;;  %v962_v28 = vadd.f32 %v956_v17, %v939_v55  ;;  %v960_v25 = vadd.f32 %v954_v9, %v937_v40 }
 0x2e9   : > { %v984_v32 = vadd.f32 %v978_v49, %v961_v26  ;;  %v985_v33 = vadd.f32 %v979_v29, %v962_v28  ;;  %v983_v35 = vadd.f32 %v977_v31, %v960_v25 }
 0x2eb   : > { %v1000_v36 = vadd.f32 %v994_v53, %v984_v32  ;;  %v1001_v37 = vadd.f32 %v994_v53, %v985_v33  ;;  %v999_v3 = vadd.f32 %v994_v53, %v983_v35 }
 0x2ed   : > { %v989_v22 = vpop.permute.xlu1 %988 }
 0x2ee   : > { %v996_v21 = vadd.f32 %v989_v22, %v980_v24  ;;  %v997_v16 = vadd.f32 %v989_v22, %v981_v10  ;;  %v998_v12 = vadd.f32 %v989_v22, %v982_v4 }
 0x2f0   : > { %1012 = vrot.lane.b32.xlu0 %v998_v12, %s1402_s22  ;;  %1010 = vrot.lane.b32.xlu2 %v997_v16, %s1402_s22 }
 0x2f1   : > { %1008 = vrot.lane.b32.xlu1 %v996_v21, %s1402_s22 }
 0x2f8   : > { %1018 = vrot.lane.b32.xlu0 %v1001_v37, %s1402_s22  ;;  %1016 = vrot.lane.b32.xlu2 %v1000_v36, %s1402_s22 }
 0x2f9   : > { %1014 = vrot.lane.b32.xlu1 %v999_v3, %s1402_s22 }
 0x34a   : > { %v1011_v23 = vpop.permute.xlu2 %1010 }
 0x352   : > { %v1017_v42 = vpop.permute.xlu2 %1016 }
 0x362   : > { %v1013_v20 = vpop.permute.xlu0 %1012 }
 0x363   : > { %v1022_v38 = vsel %vm1020_vm0, %v1011_v23, %v1013_v20  ;;  %v1009_v39 = vpop.permute.xlu1 %1008 }
 0x364   : > { %1030 = vst [vmem:[%s1514_s21 + $0x8] sm:$0xff] %v1022_v38  ;;  %v1021_v51 = vsel %vm1020_vm0, %v1009_v39, %v1011_v23 }
 0x365   : > { %1029 = vst [vmem:[%s1514_s21] sm:$0xff] %v1021_v51 }
 0x36a   : > { %v1019_v41 = vpop.permute.xlu0 %1018 }
 0x36b   : > { %v1024_v43 = vsel %vm1020_vm0, %v1017_v42, %v1019_v41  ;;  %v1015_v44 = vpop.permute.xlu1 %1014 }
 0x36c   : > { %1032 = vst [vmem:[%s1514_s21 + $0x18] sm:$0xff] %v1024_v43  ;;  %v1023_v34 = vsel %vm1020_vm0, %v1015_v44, %v1017_v42 }
 0x36d   : > { %1031 = vst [vmem:[%s1514_s21 + $0x10] sm:$0xff] %v1023_v34 }
 0x36e PF: > { %s1140_s24 = sshll.u32 %s1358_s18, 4  ;;  %s1048_s6 = sshll.u32 %s1514_s21, 4  ;;  %s1049_s6 = int_to_ptr.vmem [resolvable:$true] %s1048_s6 }
 0x36f   : > { %s1047_s5 = scalar_lea.hbm %s1874_s4, %s1140_s24  ;;  %s1034_s8 = scalar_lea.sflag [#allocation3], %s202_s29 }
 0x370   : > { %s1050_s7 = sshll.u32 %s1047_s5, 4  ;;  %s1308_s18 = scalar_lea.hbm %s1874_s4, 64  ;;  %s1051_s7 = int_to_ptr.hbm [resolvable:$true] %s1050_s7 }
 0x371   : > { %s1302_s9 = sshra.s32 %s1051_s7, 4  ;;  %s1303_s9 = int_to_ptr.hbm [resolvable:$true] %s1302_s9 }
 0x372   : > { %s1304_s10 = scalar_lea.hbm %s1303_s9, 32  ;;  %p1309_p2 = scmp.lt.s32.totalorder %s1303_s9, %s1874_s4 }
 0x373   : > { %p1305_p13 = scmp.ne.s32.totalorder %s1303_s9, %s1304_s10  ;;  %p1310_p3 = scmp.lt.s32.totalorder %s1308_s18, %s1304_s10 }
 0x375   : > { %p1306_p0 = pnand %p1305_p13, %p1471_p4  ;;  %p1311_p5 = por %p1310_p3, %p1309_p2 }
 0x377   : > { %p1307_p1 = pneg %p1306_p0 }
 0x379   : > { %p1312_p6 = pnand %p1311_p5, %p1307_p1 }
 0x37b   : > { %1315 = shalt.err (!%p1312_p6)
}
 0x37c   : > { %s1403_s29 = smov 256   ;;  %s1404_s21 = smov 512  }
 0x37d   : > { %s1405_s22 = smov 16  }
 0x37e   : > { %1141 = dma.vmem_to_hbm [thread:$0]  (%p1471_p4), %s1049_s6, 512, %s1051_s7, %s1034_s8, %s1403_s29, %s1404_s21, %s1405_s22  }
 0x37f PF: > { %p1147_p7 = scmp.ge.s32.totalorder %s1366_s20, 2  ;;  %s1065_s24 = sand.u32 1, %s1346_s15  }
 0x380   : > { %s1066_s26 = scalar_lea.sflag [#allocation3], %s1065_s24 }
 0x381   : > { %p1144_p9 = pnand %p1147_p7, %p1478_p8 }
 0x383   : > { %p1145_p10 = pneg %p1144_p9 }
 0x385   : > { %1341 = dma.done.wait (%p1145_p10), %s1066_s26, 512  }
 0x386   : > { %1343 = vsyncadd (%p1145_p10), %s1066_s26, 4294966784  ;;  %s17_s20 = sadd.s32 1, %s1366_s20   ;;  %s1877_s15 = smov %s1350_s16 }
 0x387   : > { %p14_p11 = scmp.ge.s32.totalorder %s17_s20, 4   ;;  %s1878_s16 = smov %s1354_s17 }
 0x388   : > { %s1879_s17 = smov %s1484_s28  ;;  %s1880_s18 = smov %s1362_s19 }
 0x389   : > { %s1881_s19 = smov %s1883_s23  ;;  %16 = sbr.rel (!%p14_p11) target bundleno = 4 (0x4), region = 79 }
 0x38e   :  { %1072 = vsyncpa [#allocation3], 1 }
 0x38f   :  { %1074 = vsyncpa [#allocation3 + $0x1], 1 }

</bundles_post_ra>
